<compile_context>
chip_gen: v5e
topology: v5e:2x2
jax: 0.10.0
libtpu: 0.0.40
codegen_flags: <defaults>
</compile_context>

<pallas_src>
import functools
import math

import jax
import jax.numpy as jnp
from jax import lax
from jax.experimental import pallas as pl
from jax.experimental.pallas import tpu as pltpu


# ---------------------------------------------------------------------------
# Kernel
# ---------------------------------------------------------------------------
def decoder_layer_kernel(
    # inputs
    x_ref, mem_ref,
    # self-attention
    wq1_ref, bq1_ref, wkv1_ref, bkv1_ref, wo1_ref, bo1_ref,
    # cross-attention
    wq2_ref, bq2_ref, wkv2_ref, bkv2_ref, wo2_ref, bo2_ref,
    # feed-forward
    wf1_ref, bf1_ref, wf2_ref, bf2_ref,
    # layer norms
    g1_ref, be1_ref, g2_ref, be2_ref, g3_ref, be3_ref,
    # output
    o_ref,
    # scratch (persistent across grid steps)
    kt_self, v_self, kt_cross, v_cross, ctx_buf,
    *, num_heads, d_k, ffn_chunk,
):
    f32 = jnp.float32
    cdt = x_ref.dtype                      # compute dtype (bf16); activations arrive in it
    D = num_heads * d_k
    tq = o_ref.shape[0]
    scale = 1.0 / math.sqrt(d_k)
    t_idx = pl.program_id(1)

    # ---- K/V projections + staging: ONCE per batch element (t == 0), reused by all tiles --
    @pl.when(t_idx == 0)
    def _stage_kv():
        kv_s = jnp.dot(x_ref[...], wkv1_ref[...], preferred_element_type=f32) + bkv1_ref[...]
        kt_self[...] = kv_s[:, :D].T.astype(cdt)      # (D, T): K^T, head rows contiguous
        v_self[...] = kv_s[:, D:].astype(cdt)         # (T, D)
        kv_c = jnp.dot(mem_ref[...], wkv2_ref[...], preferred_element_type=f32) + bkv2_ref[...]
        kt_cross[...] = kv_c[:, :D].T.astype(cdt)     # (D, S)
        v_cross[...] = kv_c[:, D:].astype(cdt)        # (S, D)

    def layernorm(v, g_ref, b_ref, eps=1e-5):
        mu = jnp.mean(v, axis=-1, keepdims=True)
        var = jnp.mean((v - mu) ** 2, axis=-1, keepdims=True)
        return (v - mu) * lax.rsqrt(var + eps) * g_ref[...] + b_ref[...]

    def attention(q_in_c, wq_ref, bq_ref, kt_buf, v_buf, wo_ref, bo_ref):
        # q_in_c: (tq, D) in compute dtype; K/V already projected + staged per batch element.
        q = jnp.dot(q_in_c, wq_ref[...], preferred_element_type=f32) + bq_ref[...]
        qc = (q * scale).astype(cdt)                  # fold 1/sqrt(d_k) into Q
        for h in range(num_heads):                    # heads: static lane/sublane slices
            lo = h * d_k
            s = jnp.dot(qc[:, lo:lo + d_k], kt_buf[lo:lo + d_k, :],
                        preferred_element_type=f32)   # (tq, Lk)
            s = s - jnp.max(s, axis=-1, keepdims=True)
            e = jnp.exp(s)
            p = (e * (1.0 / jnp.sum(e, axis=-1, keepdims=True))).astype(cdt)  # exact denom
            ctx_buf[:, lo:lo + d_k] = jnp.dot(
                p, v_buf[:, lo:lo + d_k], preferred_element_type=f32).astype(cdt)
        return jnp.dot(ctx_buf[...], wo_ref[...], preferred_element_type=f32) + bo_ref[...]

    # ---- query tile: sliced out of the resident x block (no separate x_q input) ----
    row0 = pl.multiple_of(t_idx * tq, tq)
    x_tile_c = x_ref[pl.ds(row0, tq), :]              # (tq, D) cdt
    x_tile = x_tile_c.astype(f32)

    # masked self-attention (mask=None) + residual + LN1
    sa = attention(x_tile_c, wq1_ref, bq1_ref, kt_self, v_self, wo1_ref, bo1_ref)
    x1 = layernorm(x_tile + sa, g1_ref, be1_ref)

    # cross-attention over encoder memory + residual + LN2
    ca = attention(x1.astype(cdt), wq2_ref, bq2_ref, kt_cross, v_cross, wo2_ref, bo2_ref)
    x2 = layernorm(x1 + ca, g2_ref, be2_ref)

    # feed-forward (chunked over d_ff via fori_loop) + residual + LN3
    d_ff = wf1_ref.shape[1]
    step = ffn_chunk if d_ff % ffn_chunk == 0 else d_ff
    x2c = x2.astype(cdt)
    if step == d_ff:
        h = jnp.maximum(jnp.dot(x2c, wf1_ref[...], preferred_element_type=f32) + bf1_ref[...], 0.0)
        ff = jnp.dot(h.astype(cdt), wf2_ref[...], preferred_element_type=f32)
    else:
        def ffn_body(c, acc):
            c0 = pl.multiple_of(c * step, step)       # step is a 128-multiple divisor of d_ff
            hid = jnp.dot(x2c, wf1_ref[:, pl.ds(c0, step)], preferred_element_type=f32)
            hid = jnp.maximum(hid + bf1_ref[:, pl.ds(c0, step)], 0.0)
            return acc + jnp.dot(hid.astype(cdt), wf2_ref[pl.ds(c0, step), :],
                                 preferred_element_type=f32)
        ff = lax.fori_loop(0, d_ff // step, ffn_body, jnp.zeros((tq, D), f32))

    x3 = layernorm(x2 + ff + bf2_ref[...], g3_ref, be3_ref)
    o_ref[...] = x3.astype(o_ref.dtype)


# ---------------------------------------------------------------------------
# Wrapper
# ---------------------------------------------------------------------------
def _vmem_capacity_bytes():
    # Narrow guard only around the hardware query (not kernel compilation).
    try:
        return int(pltpu.get_tpu_info().vmem_capacity_bytes)
    except Exception:
        return 128 * 2 ** 20


def _pick_query_tile(t, cap):
    if t <= cap:
        return t
    c = cap
    while c >= 8:
        if t % c == 0:
            return c
        c //= 2
    return t


def _pick_ffn_chunk(d_ff, target):
    if d_ff <= target:
        return d_ff
    c = (target // 128) * 128
    while c >= 128:
        if d_ff % c == 0:
            return c
        c -= 128
    return d_ff


def transformer_decoder_layer(x, memory, params, num_heads, *,
                              compute_dtype=jnp.bfloat16, query_tile=None, ffn_chunk=None):
    B, T, D = x.shape
    S = memory.shape[1]
    assert D % num_heads == 0
    d_k = D // num_heads
    cdt = jnp.dtype(compute_dtype)

    # Generation-aware tiling / limits: v7x ~64 MiB per-TC VMEM, v5e/v6e ~128 MiB.
    vmem_cap = _vmem_capacity_bytes()
    small_vmem = vmem_cap <= 64 * 2 ** 20
    tq = query_tile if query_tile is not None else _pick_query_tile(T, 128 if small_vmem else 256)
    assert T % tq == 0, "target length must be divisible by the query tile"
    d_ff = params["wf1"].shape[1]
    step = _pick_ffn_chunk(d_ff, ffn_chunk if ffn_chunk is not None else (512 if small_vmem else 1024))

    wcast = lambda w: w.astype(cdt)
    # Fused K/V projection weights: one (D, 2D) matmul produces K and V per attention block.
    wkv1 = jnp.concatenate([params["wk1"], params["wv1"]], axis=1)
    bkv1 = jnp.concatenate([params["bk1"], params["bv1"]], axis=1)
    wkv2 = jnp.concatenate([params["wk2"], params["wv2"]], axis=1)
    bkv2 = jnp.concatenate([params["bk2"], params["bv2"]], axis=1)

    weight_list = [
        wcast(params["wq1"]), params["bq1"], wcast(wkv1), bkv1, wcast(params["wo1"]), params["bo1"],
        wcast(params["wq2"]), params["bq2"], wcast(wkv2), bkv2, wcast(params["wo2"]), params["bo2"],
        wcast(params["wf1"]), params["bf1"], wcast(params["wf2"]), params["bf2"],
        params["g1"], params["be1"], params["g2"], params["be2"], params["g3"], params["be3"],
    ]

    # Activations move over HBM in the compute dtype; f32 math happens in-kernel only.
    x_c = x.astype(cdt)
    mem_c = memory.astype(cdt)

    kernel = functools.partial(decoder_layer_kernel, num_heads=num_heads, d_k=d_k, ffn_chunk=step)

    # VMEM budget: single-copy weights + double-buffered activation blocks + persistent
    # K/V scratch + transient f32 intermediates (scores, FFN hidden, residuals).
    nbytes = lambda a: int(a.size) * a.dtype.itemsize
    weight_bytes = sum(nbytes(w) for w in weight_list)
    lk_max = max(T, S)
    block_bytes = 2 * (T + S) * D * cdt.itemsize + 2 * tq * D * 4
    scratch_bytes = cdt.itemsize * (2 * T * D + 2 * S * D + tq * D)
    inter_bytes = 4 * (2 * lk_max * 2 * D + 3 * tq * lk_max + tq * step + 8 * tq * D)
    est = weight_bytes + block_bytes + scratch_bytes + inter_bytes
    vmem_limit = int(min(int(0.9 * vmem_cap), max(32 * 2 ** 20, int(1.4 * est))))

    # Weights / biases / LN params: whole-array VMEM residents via memory-space-only
    # BlockSpec (single copy, no per-grid-step DMA, no double buffering).
    vmem_space = getattr(pltpu.MemorySpace, "VMEM", None) if hasattr(pltpu, "MemorySpace") else None
    if vmem_space is not None:
        w_specs = [pl.BlockSpec(memory_space=vmem_space) for _ in weight_list]
    else:
        # Explicit feature check (no broad try/except): constant-index full blocks otherwise.
        w_specs = [pl.BlockSpec(w.shape, lambda *_, nd=w.ndim: (0,) * nd) for w in weight_list]

    fn = pl.pallas_call(
        kernel,
        out_shape=jax.ShapeDtypeStruct((B, T, D), jnp.float32),
        grid_spec=pltpu.PrefetchScalarGridSpec(
            num_scalar_prefetch=0,
            grid=(B, T // tq),
            in_specs=[pl.BlockSpec((None, T, D), lambda b, t: (b, 0, 0)),   # x: resident per b
                      pl.BlockSpec((None, S, D), lambda b, t: (b, 0, 0))]   # memory: resident per b
                     + w_specs,
            out_specs=pl.BlockSpec((None, tq, D), lambda b, t: (b, t, 0)),
            scratch_shapes=[
                pltpu.VMEM((D, T), cdt),   # K^T (self),  head-major rows
                pltpu.VMEM((T, D), cdt),   # V   (self)
                pltpu.VMEM((D, S), cdt),   # K^T (cross)
                pltpu.VMEM((S, D), cdt),   # V   (cross)
                pltpu.VMEM((tq, D), cdt),  # concatenated attention heads (pre w_o)
            ],
        ),
        compiler_params=pltpu.CompilerParams(
            # t-axis carries the staged K/V scratch -> sequential; batch axis is megacore-parallel.
            dimension_semantics=("parallel", "arbitrary"),
            vmem_limit_bytes=vmem_limit,
        ),
    )
    return fn(x_c, mem_c, *weight_list)


# ---------------------------------------------------------------------------
# Pure-JAX reference (mirrors the PyTorch module, eval mode, no masks)
# ---------------------------------------------------------------------------
def _ref_mha(q_in, kv_in, p, pre, num_heads):
    B, T, D = q_in.shape
    S = kv_in.shape[1]
    d_k = D // num_heads
    lin = lambda x, w, b: x @ w + b
    Q = lin(q_in, p[f"wq{pre}"], p[f"bq{pre}"]).reshape(B, T, num_heads, d_k).transpose(0, 2, 1, 3)
    K = lin(kv_in, p[f"wk{pre}"], p[f"bk{pre}"]).reshape(B, S, num_heads, d_k).transpose(0, 2, 1, 3)
    V = lin(kv_in, p[f"wv{pre}"], p[f"bv{pre}"]).reshape(B, S, num_heads, d_k).transpose(0, 2, 1, 3)
    scores = jnp.einsum("bhtd,bhsd->bhts", Q, K) / math.sqrt(d_k)
    attn = jax.nn.softmax(scores, axis=-1)
    out = jnp.einsum("bhts,bhsd->bhtd", attn, V).transpose(0, 2, 1, 3).reshape(B, T, D)
    return lin(out, p[f"wo{pre}"], p[f"bo{pre}"])


def _ref_layer(x, memory, p, num_heads):
    ln = lambda x, g, b: (x - x.mean(-1, keepdims=True)) * jax.lax.rsqrt(
        x.var(-1, keepdims=True) + 1e-5) * g + b
    x = ln(x + _ref_mha(x, x, p, 1, num_heads), p["g1"], p["be1"])
    x = ln(x + _ref_mha(x, memory, p, 2, num_heads), p["g2"], p["be2"])
    ff = jnp.maximum(x @ p["wf1"] + p["bf1"], 0.0) @ p["wf2"] + p["bf2"]
    x = ln(x + ff, p["g3"], p["be3"])
    return x


def make_params(key, d_model, d_ff):
    keys = jax.random.split(key, 12)
    p = {}
    names = ["wq1", "wk1", "wv1", "wo1", "wq2", "wk2", "wv2", "wo2"]
    for i, n in enumerate(names):
        p[n] = 0.02 * jax.random.normal(keys[i], (d_model, d_model), jnp.float32)
        p["b" + n[1:]] = jnp.zeros((1, d_model), jnp.float32)
    p["wf1"] = 0.02 * jax.random.normal(keys[8], (d_model, d_ff), jnp.float32)
    p["bf1"] = jnp.zeros((1, d_ff), jnp.float32)
    p["wf2"] = 0.02 * jax.random.normal(keys[9], (d_ff, d_model), jnp.float32)
    p["bf2"] = jnp.zeros((1, d_model), jnp.float32)
    for i in (1, 2, 3):
        p[f"g{i}"] = jnp.ones((1, d_model), jnp.float32)
        p[f"be{i}"] = jnp.zeros((1, d_model), jnp.float32)
    return p


if __name__ == "__main__":
    # Config 1: minimal shapes (single query tile, un-chunked FFN).
    B, T, S, D, H, D_FF = 2, 8, 8, 32, 4, 64
    kx, km, kp = jax.random.split(jax.random.PRNGKey(0), 3)
    x = jax.random.normal(kx, (B, T, D), jnp.float32)
    memory = jax.random.normal(km, (B, S, D), jnp.float32)
    params = make_params(kp, D, D_FF)
    out = jax.block_until_ready(transformer_decoder_layer(x, memory, params, num_heads=H))
    ref = _ref_layer(x, memory, params, H)
    assert out.shape == (B, T, D)
    err = float(jnp.max(jnp.abs(out - ref)))
    assert jnp.allclose(out, ref, atol=3e-2, rtol=3e-2), f"config1 mismatch, max|diff|={err}"

    # Config 2: multiple query tiles + chunked FFN (exercises per-batch K/V staging reuse
    # across tiles and the fori_loop FFN path).
    B2, T2, S2, D2, H2, DFF2 = 2, 16, 8, 128, 4, 256
    k2 = jax.random.split(jax.random.PRNGKey(1), 3)
    x2 = jax.random.normal(k2[0], (B2, T2, D2), jnp.float32)
    mem2 = jax.random.normal(k2[1], (B2, S2, D2), jnp.float32)
    p2 = make_params(k2[2], D2, DFF2)
    out2 = jax.block_until_ready(
        transformer_decoder_layer(x2, mem2, p2, num_heads=H2, query_tile=8, ffn_chunk=128))
    ref2 = _ref_layer(x2, mem2, p2, H2)
    err2 = float(jnp.max(jnp.abs(out2 - ref2)))
    assert jnp.allclose(out2, ref2, atol=3e-2, rtol=3e-2), f"config2 mismatch, max|diff|={err2}"

    # TODO(synk): dropout layers are identity here (eval-mode semantics); training-mode
    # dropout would need pltpu.prng_seed / prng_random_bits. tgt_mask/memory_mask are None.
    print("KERNEL_OK")
</pallas_src>

<mosaic_0001>
module attributes {stable_mosaic.version = 11 : i64} {
  func.func @decoder_layer_kernel(%arg0: i32, %arg1: i32, %arg2: memref<1x8x32xbf16, #tpu.memory_space<vmem>>, %arg3: memref<1x8x32xbf16, #tpu.memory_space<vmem>>, %arg4: memref<32x32xbf16, #tpu.memory_space<vmem>>, %arg5: memref<1x32xf32, #tpu.memory_space<vmem>>, %arg6: memref<32x64xbf16, #tpu.memory_space<vmem>>, %arg7: memref<1x64xf32, #tpu.memory_space<vmem>>, %arg8: memref<32x32xbf16, #tpu.memory_space<vmem>>, %arg9: memref<1x32xf32, #tpu.memory_space<vmem>>, %arg10: memref<32x32xbf16, #tpu.memory_space<vmem>>, %arg11: memref<1x32xf32, #tpu.memory_space<vmem>>, %arg12: memref<32x64xbf16, #tpu.memory_space<vmem>>, %arg13: memref<1x64xf32, #tpu.memory_space<vmem>>, %arg14: memref<32x32xbf16, #tpu.memory_space<vmem>>, %arg15: memref<1x32xf32, #tpu.memory_space<vmem>>, %arg16: memref<32x64xbf16, #tpu.memory_space<vmem>>, %arg17: memref<1x64xf32, #tpu.memory_space<vmem>>, %arg18: memref<64x32xbf16, #tpu.memory_space<vmem>>, %arg19: memref<1x32xf32, #tpu.memory_space<vmem>>, %arg20: memref<1x32xf32, #tpu.memory_space<vmem>>, %arg21: memref<1x32xf32, #tpu.memory_space<vmem>>, %arg22: memref<1x32xf32, #tpu.memory_space<vmem>>, %arg23: memref<1x32xf32, #tpu.memory_space<vmem>>, %arg24: memref<1x32xf32, #tpu.memory_space<vmem>>, %arg25: memref<1x32xf32, #tpu.memory_space<vmem>>, %arg26: memref<1x8x32xf32, #tpu.memory_space<vmem>>, %arg27: memref<32x8xbf16, #tpu.memory_space<vmem>>, %arg28: memref<8x32xbf16, #tpu.memory_space<vmem>>, %arg29: memref<32x8xbf16, #tpu.memory_space<vmem>>, %arg30: memref<8x32xbf16, #tpu.memory_space<vmem>>, %arg31: memref<8x32xbf16, #tpu.memory_space<vmem>>) attributes {dimension_semantics = [#tpu.dimension_semantics<parallel>, #tpu.dimension_semantics<arbitrary>], iteration_bounds = array<i64: 2, 1>, scalar_prefetch = 0 : i64, scratch_operands = 5 : i64, tpu.core_type = #tpu.core_type<tc>, window_params = [{transform_indices = @transform_0, window_bounds = array<i64: 1, 8, 32>}, {transform_indices = @transform_1, window_bounds = array<i64: 1, 8, 32>}, {pipeline_mode = #tpu.pipeline_mode<synchronous>, transform_indices = @transform_2, window_bounds = array<i64: 32, 32>}, {pipeline_mode = #tpu.pipeline_mode<synchronous>, transform_indices = @transform_3, window_bounds = array<i64: 1, 32>}, {pipeline_mode = #tpu.pipeline_mode<synchronous>, transform_indices = @transform_4, window_bounds = array<i64: 32, 64>}, {pipeline_mode = #tpu.pipeline_mode<synchronous>, transform_indices = @transform_5, window_bounds = array<i64: 1, 64>}, {pipeline_mode = #tpu.pipeline_mode<synchronous>, transform_indices = @transform_6, window_bounds = array<i64: 32, 32>}, {pipeline_mode = #tpu.pipeline_mode<synchronous>, transform_indices = @transform_7, window_bounds = array<i64: 1, 32>}, {pipeline_mode = #tpu.pipeline_mode<synchronous>, transform_indices = @transform_8, window_bounds = array<i64: 32, 32>}, {pipeline_mode = #tpu.pipeline_mode<synchronous>, transform_indices = @transform_9, window_bounds = array<i64: 1, 32>}, {pipeline_mode = #tpu.pipeline_mode<synchronous>, transform_indices = @transform_10, window_bounds = array<i64: 32, 64>}, {pipeline_mode = #tpu.pipeline_mode<synchronous>, transform_indices = @transform_11, window_bounds = array<i64: 1, 64>}, {pipeline_mode = #tpu.pipeline_mode<synchronous>, transform_indices = @transform_12, window_bounds = array<i64: 32, 32>}, {pipeline_mode = #tpu.pipeline_mode<synchronous>, transform_indices = @transform_13, window_bounds = array<i64: 1, 32>}, {pipeline_mode = #tpu.pipeline_mode<synchronous>, transform_indices = @transform_14, window_bounds = array<i64: 32, 64>}, {pipeline_mode = #tpu.pipeline_mode<synchronous>, transform_indices = @transform_15, window_bounds = array<i64: 1, 64>}, {pipeline_mode = #tpu.pipeline_mode<synchronous>, transform_indices = @transform_16, window_bounds = array<i64: 64, 32>}, {pipeline_mode = #tpu.pipeline_mode<synchronous>, transform_indices = @transform_17, window_bounds = array<i64: 1, 32>}, {pipeline_mode = #tpu.pipeline_mode<synchronous>, transform_indices = @transform_18, window_bounds = array<i64: 1, 32>}, {pipeline_mode = #tpu.pipeline_mode<synchronous>, transform_indices = @transform_19, window_bounds = array<i64: 1, 32>}, {pipeline_mode = #tpu.pipeline_mode<synchronous>, transform_indices = @transform_20, window_bounds = array<i64: 1, 32>}, {pipeline_mode = #tpu.pipeline_mode<synchronous>, transform_indices = @transform_21, window_bounds = array<i64: 1, 32>}, {pipeline_mode = #tpu.pipeline_mode<synchronous>, transform_indices = @transform_22, window_bounds = array<i64: 1, 32>}, {pipeline_mode = #tpu.pipeline_mode<synchronous>, transform_indices = @transform_23, window_bounds = array<i64: 1, 32>}, {transform_indices = @transform_24, window_bounds = array<i64: 1, 8, 32>}]} {
    %c0_i32 = arith.constant 0 : i32
    %0 = arith.cmpi eq, %arg1, %c0_i32 : i32
    %1 = arith.extui %0 : i1 to i32
    %c0_i32_0 = arith.constant 0 : i32
    %2 = arith.cmpi ne, %1, %c0_i32_0 : i32
    scf.if %2 {
      %c0_153 = arith.constant 0 : index
      %c0_154 = arith.constant 0 : index
      %c0_155 = arith.constant 0 : index
      %282 = vector.load %arg2[%c0_153, %c0_154, %c0_155] : memref<1x8x32xbf16, #tpu.memory_space<vmem>>, vector<1x8x32xbf16>
      %283 = vector.shape_cast %282 : vector<1x8x32xbf16> to vector<8x32xbf16>
      %c0_156 = arith.constant 0 : index
      %c0_157 = arith.constant 0 : index
      %284 = vector.load %arg6[%c0_156, %c0_157] : memref<32x64xbf16, #tpu.memory_space<vmem>>, vector<32x64xbf16>
      %cst_158 = arith.constant dense<0.000000e+00> : vector<8x64xf32>
      %285 = tpu.matmul %283, %284, %cst_158 {dimension_numbers = #tpu.dot_dimension_numbers<[1], [0], [0], [1], [0, 0, 1, 1], [], []>} : vector<8x32xbf16>, vector<32x64xbf16>, vector<8x64xf32> -> vector<8x64xf32>
      %c0_159 = arith.constant 0 : index
      %c0_160 = arith.constant 0 : index
      %286 = vector.load %arg7[%c0_159, %c0_160] : memref<1x64xf32, #tpu.memory_space<vmem>>, vector<1x64xf32>
      %287 = vector.broadcast %286 : vector<1x64xf32> to vector<8x64xf32>
      %288 = arith.addf %285, %287 : vector<8x64xf32>
      %289 = vector.extract_strided_slice %288 {offsets = [0, 0], sizes = [8, 32], strides = [1, 1]} : vector<8x64xf32> to vector<8x32xf32>
      %290 = tpu.transpose %289, [1, 0] : vector<8x32xf32> -> vector<32x8xf32>
      %291 = arith.truncf %290 : vector<32x8xf32> to vector<32x8xbf16>
      %c0_161 = arith.constant 0 : index
      %c0_162 = arith.constant 0 : index
      %292 = vector.load %arg27[%c0_161, %c0_162] : memref<32x8xbf16, #tpu.memory_space<vmem>>, vector<32x8xbf16>
      tpu.vector_store %arg27[%c0_161, %c0_162], %291 {strides = array<i32>} : memref<32x8xbf16, #tpu.memory_space<vmem>>, vector<32x8xbf16>,
      %293 = vector.extract_strided_slice %288 {offsets = [0, 32], sizes = [8, 32], strides = [1, 1]} : vector<8x64xf32> to vector<8x32xf32>
      %294 = arith.truncf %293 : vector<8x32xf32> to vector<8x32xbf16>
      %c0_163 = arith.constant 0 : index
      %c0_164 = arith.constant 0 : index
      %295 = vector.load %arg28[%c0_163, %c0_164] : memref<8x32xbf16, #tpu.memory_space<vmem>>, vector<8x32xbf16>
      tpu.vector_store %arg28[%c0_163, %c0_164], %294 {strides = array<i32>} : memref<8x32xbf16, #tpu.memory_space<vmem>>, vector<8x32xbf16>,
      %c0_165 = arith.constant 0 : index
      %c0_166 = arith.constant 0 : index
      %c0_167 = arith.constant 0 : index
      %296 = vector.load %arg3[%c0_165, %c0_166, %c0_167] : memref<1x8x32xbf16, #tpu.memory_space<vmem>>, vector<1x8x32xbf16>
      %297 = vector.shape_cast %296 : vector<1x8x32xbf16> to vector<8x32xbf16>
      %c0_168 = arith.constant 0 : index
      %c0_169 = arith.constant 0 : index
      %298 = vector.load %arg12[%c0_168, %c0_169] : memref<32x64xbf16, #tpu.memory_space<vmem>>, vector<32x64xbf16>
      %cst_170 = arith.constant dense<0.000000e+00> : vector<8x64xf32>
      %299 = tpu.matmul %297, %298, %cst_170 {dimension_numbers = #tpu.dot_dimension_numbers<[1], [0], [0], [1], [0, 0, 1, 1], [], []>} : vector<8x32xbf16>, vector<32x64xbf16>, vector<8x64xf32> -> vector<8x64xf32>
      %c0_171 = arith.constant 0 : index
      %c0_172 = arith.constant 0 : index
      %300 = vector.load %arg13[%c0_171, %c0_172] : memref<1x64xf32, #tpu.memory_space<vmem>>, vector<1x64xf32>
      %301 = vector.broadcast %300 : vector<1x64xf32> to vector<8x64xf32>
      %302 = arith.addf %299, %301 : vector<8x64xf32>
      %303 = vector.extract_strided_slice %302 {offsets = [0, 0], sizes = [8, 32], strides = [1, 1]} : vector<8x64xf32> to vector<8x32xf32>
      %304 = tpu.transpose %303, [1, 0] : vector<8x32xf32> -> vector<32x8xf32>
      %305 = arith.truncf %304 : vector<32x8xf32> to vector<32x8xbf16>
      %c0_173 = arith.constant 0 : index
      %c0_174 = arith.constant 0 : index
      %306 = vector.load %arg29[%c0_173, %c0_174] : memref<32x8xbf16, #tpu.memory_space<vmem>>, vector<32x8xbf16>
      tpu.vector_store %arg29[%c0_173, %c0_174], %305 {strides = array<i32>} : memref<32x8xbf16, #tpu.memory_space<vmem>>, vector<32x8xbf16>,
      %307 = vector.extract_strided_slice %302 {offsets = [0, 32], sizes = [8, 32], strides = [1, 1]} : vector<8x64xf32> to vector<8x32xf32>
      %308 = arith.truncf %307 : vector<8x32xf32> to vector<8x32xbf16>
      %c0_175 = arith.constant 0 : index
      %c0_176 = arith.constant 0 : index
      %309 = vector.load %arg30[%c0_175, %c0_176] : memref<8x32xbf16, #tpu.memory_space<vmem>>, vector<8x32xbf16>
      tpu.vector_store %arg30[%c0_175, %c0_176], %308 {strides = array<i32>} : memref<8x32xbf16, #tpu.memory_space<vmem>>, vector<8x32xbf16>,
    } else {
    }
    %c8_i32 = arith.constant 8 : i32
    %3 = arith.muli %arg1, %c8_i32 : i32
    %4 = tpu.assume_multiple %3, 8 : i32
    %c0 = arith.constant 0 : index
    %5 = arith.index_cast %4 : i32 to index
    %c0_1 = arith.constant 0 : index
    %6 = vector.load %arg2[%c0, %5, %c0_1] : memref<1x8x32xbf16, #tpu.memory_space<vmem>>, vector<1x8x32xbf16>
    %7 = vector.shape_cast %6 : vector<1x8x32xbf16> to vector<8x32xbf16>
    %8 = arith.extf %7 : vector<8x32xbf16> to vector<8x32xf32>
    %c0_2 = arith.constant 0 : index
    %c0_3 = arith.constant 0 : index
    %9 = vector.load %arg4[%c0_2, %c0_3] : memref<32x32xbf16, #tpu.memory_space<vmem>>, vector<32x32xbf16>
    %cst = arith.constant dense<0.000000e+00> : vector<8x32xf32>
    %10 = tpu.matmul %7, %9, %cst {dimension_numbers = #tpu.dot_dimension_numbers<[1], [0], [0], [1], [0, 0, 1, 1], [], []>} : vector<8x32xbf16>, vector<32x32xbf16>, vector<8x32xf32> -> vector<8x32xf32>
    %c0_4 = arith.constant 0 : index
    %c0_5 = arith.constant 0 : index
    %11 = vector.load %arg5[%c0_4, %c0_5] : memref<1x32xf32, #tpu.memory_space<vmem>>, vector<1x32xf32>
    %12 = vector.broadcast %11 : vector<1x32xf32> to vector<8x32xf32>
    %13 = arith.addf %10, %12 : vector<8x32xf32>
    %cst_6 = arith.constant 0.353553385 : f32
    %14 = vector.broadcast %cst_6 : f32 to vector<8x32xf32>
    %15 = arith.mulf %13, %14 : vector<8x32xf32>
    %16 = arith.truncf %15 : vector<8x32xf32> to vector<8x32xbf16>
    %17 = vector.extract_strided_slice %16 {offsets = [0, 0], sizes = [8, 8], strides = [1, 1]} : vector<8x32xbf16> to vector<8x8xbf16>
    %c0_7 = arith.constant 0 : index
    %c0_8 = arith.constant 0 : index
    %18 = vector.load %arg27[%c0_7, %c0_8] : memref<32x8xbf16, #tpu.memory_space<vmem>>, vector<8x8xbf16>
    %cst_9 = arith.constant dense<0.000000e+00> : vector<8x8xf32>
    %19 = tpu.matmul %17, %18, %cst_9 {dimension_numbers = #tpu.dot_dimension_numbers<[1], [0], [0], [1], [0, 0, 1, 1], [], []>} : vector<8x8xbf16>, vector<8x8xbf16>, vector<8x8xf32> -> vector<8x8xf32>
    %cst_10 = arith.constant dense<0xFF800000> : vector<8xf32>
    %20 = vector.multi_reduction <maximumf>, %19, %cst_10 [1] : vector<8x8xf32> to vector<8xf32>
    %21 = vector.shape_cast %20 : vector<8xf32> to vector<8x1xf32>
    %22 = vector.broadcast %21 : vector<8x1xf32> to vector<8x8xf32>
    %23 = arith.subf %19, %22 : vector<8x8xf32>
    %24 = math.exp %23 : vector<8x8xf32>
    %cst_11 = arith.constant dense<0.000000e+00> : vector<8xf32>
    %25 = vector.multi_reduction <add>, %24, %cst_11 [1] : vector<8x8xf32> to vector<8xf32>
    %26 = vector.shape_cast %25 : vector<8xf32> to vector<8x1xf32>
    %cst_12 = arith.constant 1.000000e+00 : f32
    %27 = vector.broadcast %cst_12 : f32 to vector<8x1xf32>
    %28 = arith.divf %27, %26 : vector<8x1xf32>
    %29 = vector.broadcast %28 : vector<8x1xf32> to vector<8x8xf32>
    %30 = arith.mulf %24, %29 : vector<8x8xf32>
    %31 = arith.truncf %30 : vector<8x8xf32> to vector<8x8xbf16>
    %c0_13 = arith.constant 0 : index
    %c0_14 = arith.constant 0 : index
    %32 = vector.load %arg28[%c0_13, %c0_14] : memref<8x32xbf16, #tpu.memory_space<vmem>>, vector<8x8xbf16>
    %cst_15 = arith.constant dense<0.000000e+00> : vector<8x8xf32>
    %33 = tpu.matmul %31, %32, %cst_15 {dimension_numbers = #tpu.dot_dimension_numbers<[1], [0], [0], [1], [0, 0, 1, 1], [], []>} : vector<8x8xbf16>, vector<8x8xbf16>, vector<8x8xf32> -> vector<8x8xf32>
    %34 = arith.truncf %33 : vector<8x8xf32> to vector<8x8xbf16>
    %c0_16 = arith.constant 0 : index
    %c0_17 = arith.constant 0 : index
    %35 = vector.load %arg31[%c0_16, %c0_17] : memref<8x32xbf16, #tpu.memory_space<vmem>>, vector<8x8xbf16>
    tpu.vector_store %arg31[%c0_16, %c0_17], %34 {strides = array<i32>} : memref<8x32xbf16, #tpu.memory_space<vmem>>, vector<8x8xbf16>,
    %36 = vector.extract_strided_slice %16 {offsets = [0, 8], sizes = [8, 8], strides = [1, 1]} : vector<8x32xbf16> to vector<8x8xbf16>
    %c8 = arith.constant 8 : index
    %c0_18 = arith.constant 0 : index
    %37 = vector.load %arg27[%c8, %c0_18] : memref<32x8xbf16, #tpu.memory_space<vmem>>, vector<8x8xbf16>
    %cst_19 = arith.constant dense<0.000000e+00> : vector<8x8xf32>
    %38 = tpu.matmul %36, %37, %cst_19 {dimension_numbers = #tpu.dot_dimension_numbers<[1], [0], [0], [1], [0, 0, 1, 1], [], []>} : vector<8x8xbf16>, vector<8x8xbf16>, vector<8x8xf32> -> vector<8x8xf32>
    %cst_20 = arith.constant dense<0xFF800000> : vector<8xf32>
    %39 = vector.multi_reduction <maximumf>, %38, %cst_20 [1] : vector<8x8xf32> to vector<8xf32>
    %40 = vector.shape_cast %39 : vector<8xf32> to vector<8x1xf32>
    %41 = vector.broadcast %40 : vector<8x1xf32> to vector<8x8xf32>
    %42 = arith.subf %38, %41 : vector<8x8xf32>
    %43 = math.exp %42 : vector<8x8xf32>
    %cst_21 = arith.constant dense<0.000000e+00> : vector<8xf32>
    %44 = vector.multi_reduction <add>, %43, %cst_21 [1] : vector<8x8xf32> to vector<8xf32>
    %45 = vector.shape_cast %44 : vector<8xf32> to vector<8x1xf32>
    %cst_22 = arith.constant 1.000000e+00 : f32
    %46 = vector.broadcast %cst_22 : f32 to vector<8x1xf32>
    %47 = arith.divf %46, %45 : vector<8x1xf32>
    %48 = vector.broadcast %47 : vector<8x1xf32> to vector<8x8xf32>
    %49 = arith.mulf %43, %48 : vector<8x8xf32>
    %50 = arith.truncf %49 : vector<8x8xf32> to vector<8x8xbf16>
    %c0_23 = arith.constant 0 : index
    %c8_24 = arith.constant 8 : index
    %51 = vector.load %arg28[%c0_23, %c8_24] : memref<8x32xbf16, #tpu.memory_space<vmem>>, vector<8x8xbf16>
    %cst_25 = arith.constant dense<0.000000e+00> : vector<8x8xf32>
    %52 = tpu.matmul %50, %51, %cst_25 {dimension_numbers = #tpu.dot_dimension_numbers<[1], [0], [0], [1], [0, 0, 1, 1], [], []>} : vector<8x8xbf16>, vector<8x8xbf16>, vector<8x8xf32> -> vector<8x8xf32>
    %53 = arith.truncf %52 : vector<8x8xf32> to vector<8x8xbf16>
    %c0_26 = arith.constant 0 : index
    %c8_27 = arith.constant 8 : index
    %54 = vector.load %arg31[%c0_26, %c8_27] : memref<8x32xbf16, #tpu.memory_space<vmem>>, vector<8x8xbf16>
    tpu.vector_store %arg31[%c0_26, %c8_27], %53 {strides = array<i32>} : memref<8x32xbf16, #tpu.memory_space<vmem>>, vector<8x8xbf16>,
    %55 = vector.extract_strided_slice %16 {offsets = [0, 16], sizes = [8, 8], strides = [1, 1]} : vector<8x32xbf16> to vector<8x8xbf16>
    %c16 = arith.constant 16 : index
    %c0_28 = arith.constant 0 : index
    %56 = vector.load %arg27[%c16, %c0_28] : memref<32x8xbf16, #tpu.memory_space<vmem>>, vector<8x8xbf16>
    %cst_29 = arith.constant dense<0.000000e+00> : vector<8x8xf32>
    %57 = tpu.matmul %55, %56, %cst_29 {dimension_numbers = #tpu.dot_dimension_numbers<[1], [0], [0], [1], [0, 0, 1, 1], [], []>} : vector<8x8xbf16>, vector<8x8xbf16>, vector<8x8xf32> -> vector<8x8xf32>
    %cst_30 = arith.constant dense<0xFF800000> : vector<8xf32>
    %58 = vector.multi_reduction <maximumf>, %57, %cst_30 [1] : vector<8x8xf32> to vector<8xf32>
    %59 = vector.shape_cast %58 : vector<8xf32> to vector<8x1xf32>
    %60 = vector.broadcast %59 : vector<8x1xf32> to vector<8x8xf32>
    %61 = arith.subf %57, %60 : vector<8x8xf32>
    %62 = math.exp %61 : vector<8x8xf32>
    %cst_31 = arith.constant dense<0.000000e+00> : vector<8xf32>
    %63 = vector.multi_reduction <add>, %62, %cst_31 [1] : vector<8x8xf32> to vector<8xf32>
    %64 = vector.shape_cast %63 : vector<8xf32> to vector<8x1xf32>
    %cst_32 = arith.constant 1.000000e+00 : f32
    %65 = vector.broadcast %cst_32 : f32 to vector<8x1xf32>
    %66 = arith.divf %65, %64 : vector<8x1xf32>
    %67 = vector.broadcast %66 : vector<8x1xf32> to vector<8x8xf32>
    %68 = arith.mulf %62, %67 : vector<8x8xf32>
    %69 = arith.truncf %68 : vector<8x8xf32> to vector<8x8xbf16>
    %c0_33 = arith.constant 0 : index
    %c16_34 = arith.constant 16 : index
    %70 = vector.load %arg28[%c0_33, %c16_34] : memref<8x32xbf16, #tpu.memory_space<vmem>>, vector<8x8xbf16>
    %cst_35 = arith.constant dense<0.000000e+00> : vector<8x8xf32>
    %71 = tpu.matmul %69, %70, %cst_35 {dimension_numbers = #tpu.dot_dimension_numbers<[1], [0], [0], [1], [0, 0, 1, 1], [], []>} : vector<8x8xbf16>, vector<8x8xbf16>, vector<8x8xf32> -> vector<8x8xf32>
    %72 = arith.truncf %71 : vector<8x8xf32> to vector<8x8xbf16>
    %c0_36 = arith.constant 0 : index
    %c16_37 = arith.constant 16 : index
    %73 = vector.load %arg31[%c0_36, %c16_37] : memref<8x32xbf16, #tpu.memory_space<vmem>>, vector<8x8xbf16>
    tpu.vector_store %arg31[%c0_36, %c16_37], %72 {strides = array<i32>} : memref<8x32xbf16, #tpu.memory_space<vmem>>, vector<8x8xbf16>,
    %74 = vector.extract_strided_slice %16 {offsets = [0, 24], sizes = [8, 8], strides = [1, 1]} : vector<8x32xbf16> to vector<8x8xbf16>
    %c24 = arith.constant 24 : index
    %c0_38 = arith.constant 0 : index
    %75 = vector.load %arg27[%c24, %c0_38] : memref<32x8xbf16, #tpu.memory_space<vmem>>, vector<8x8xbf16>
    %cst_39 = arith.constant dense<0.000000e+00> : vector<8x8xf32>
    %76 = tpu.matmul %74, %75, %cst_39 {dimension_numbers = #tpu.dot_dimension_numbers<[1], [0], [0], [1], [0, 0, 1, 1], [], []>} : vector<8x8xbf16>, vector<8x8xbf16>, vector<8x8xf32> -> vector<8x8xf32>
    %cst_40 = arith.constant dense<0xFF800000> : vector<8xf32>
    %77 = vector.multi_reduction <maximumf>, %76, %cst_40 [1] : vector<8x8xf32> to vector<8xf32>
    %78 = vector.shape_cast %77 : vector<8xf32> to vector<8x1xf32>
    %79 = vector.broadcast %78 : vector<8x1xf32> to vector<8x8xf32>
    %80 = arith.subf %76, %79 : vector<8x8xf32>
    %81 = math.exp %80 : vector<8x8xf32>
    %cst_41 = arith.constant dense<0.000000e+00> : vector<8xf32>
    %82 = vector.multi_reduction <add>, %81, %cst_41 [1] : vector<8x8xf32> to vector<8xf32>
    %83 = vector.shape_cast %82 : vector<8xf32> to vector<8x1xf32>
    %cst_42 = arith.constant 1.000000e+00 : f32
    %84 = vector.broadcast %cst_42 : f32 to vector<8x1xf32>
    %85 = arith.divf %84, %83 : vector<8x1xf32>
    %86 = vector.broadcast %85 : vector<8x1xf32> to vector<8x8xf32>
    %87 = arith.mulf %81, %86 : vector<8x8xf32>
    %88 = arith.truncf %87 : vector<8x8xf32> to vector<8x8xbf16>
    %c0_43 = arith.constant 0 : index
    %c24_44 = arith.constant 24 : index
    %89 = vector.load %arg28[%c0_43, %c24_44] : memref<8x32xbf16, #tpu.memory_space<vmem>>, vector<8x8xbf16>
    %cst_45 = arith.constant dense<0.000000e+00> : vector<8x8xf32>
    %90 = tpu.matmul %88, %89, %cst_45 {dimension_numbers = #tpu.dot_dimension_numbers<[1], [0], [0], [1], [0, 0, 1, 1], [], []>} : vector<8x8xbf16>, vector<8x8xbf16>, vector<8x8xf32> -> vector<8x8xf32>
    %91 = arith.truncf %90 : vector<8x8xf32> to vector<8x8xbf16>
    %c0_46 = arith.constant 0 : index
    %c24_47 = arith.constant 24 : index
    %92 = vector.load %arg31[%c0_46, %c24_47] : memref<8x32xbf16, #tpu.memory_space<vmem>>, vector<8x8xbf16>
    tpu.vector_store %arg31[%c0_46, %c24_47], %91 {strides = array<i32>} : memref<8x32xbf16, #tpu.memory_space<vmem>>, vector<8x8xbf16>,
    %c0_48 = arith.constant 0 : index
    %c0_49 = arith.constant 0 : index
    %93 = vector.load %arg31[%c0_48, %c0_49] : memref<8x32xbf16, #tpu.memory_space<vmem>>, vector<8x32xbf16>
    %c0_50 = arith.constant 0 : index
    %c0_51 = arith.constant 0 : index
    %94 = vector.load %arg8[%c0_50, %c0_51] : memref<32x32xbf16, #tpu.memory_space<vmem>>, vector<32x32xbf16>
    %cst_52 = arith.constant dense<0.000000e+00> : vector<8x32xf32>
    %95 = tpu.matmul %93, %94, %cst_52 {dimension_numbers = #tpu.dot_dimension_numbers<[1], [0], [0], [1], [0, 0, 1, 1], [], []>} : vector<8x32xbf16>, vector<32x32xbf16>, vector<8x32xf32> -> vector<8x32xf32>
    %c0_53 = arith.constant 0 : index
    %c0_54 = arith.constant 0 : index
    %96 = vector.load %arg9[%c0_53, %c0_54] : memref<1x32xf32, #tpu.memory_space<vmem>>, vector<1x32xf32>
    %97 = vector.broadcast %96 : vector<1x32xf32> to vector<8x32xf32>
    %98 = arith.addf %95, %97 : vector<8x32xf32>
    %99 = arith.addf %8, %98 : vector<8x32xf32>
    %cst_55 = arith.constant dense<0.000000e+00> : vector<8xf32>
    %100 = vector.multi_reduction <add>, %99, %cst_55 [1] : vector<8x32xf32> to vector<8xf32>
    %101 = vector.shape_cast %100 : vector<8xf32> to vector<8x1xf32>
    %cst_56 = arith.constant 3.200000e+01 : f32
    %102 = vector.broadcast %cst_56 : f32 to vector<8x1xf32>
    %103 = arith.divf %101, %102 : vector<8x1xf32>
    %104 = vector.broadcast %103 : vector<8x1xf32> to vector<8x32xf32>
    %105 = arith.subf %99, %104 : vector<8x32xf32>
    %106 = arith.mulf %105, %105 : vector<8x32xf32>
    %cst_57 = arith.constant dense<0.000000e+00> : vector<8xf32>
    %107 = vector.multi_reduction <add>, %106, %cst_57 [1] : vector<8x32xf32> to vector<8xf32>
    %108 = vector.shape_cast %107 : vector<8xf32> to vector<8x1xf32>
    %cst_58 = arith.constant 3.200000e+01 : f32
    %109 = vector.broadcast %cst_58 : f32 to vector<8x1xf32>
    %110 = arith.divf %108, %109 : vector<8x1xf32>
    %111 = vector.broadcast %103 : vector<8x1xf32> to vector<8x32xf32>
    %112 = arith.subf %99, %111 : vector<8x32xf32>
    %cst_59 = arith.constant 9.99999974E-6 : f32
    %113 = vector.broadcast %cst_59 : f32 to vector<8x1xf32>
    %114 = arith.addf %110, %113 : vector<8x1xf32>
    %115 = math.rsqrt %114 : vector<8x1xf32>
    %116 = vector.broadcast %115 : vector<8x1xf32> to vector<8x32xf32>
    %117 = arith.mulf %112, %116 : vector<8x32xf32>
    %c0_60 = arith.constant 0 : index
    %c0_61 = arith.constant 0 : index
    %118 = vector.load %arg20[%c0_60, %c0_61] : memref<1x32xf32, #tpu.memory_space<vmem>>, vector<1x32xf32>
    %119 = vector.broadcast %118 : vector<1x32xf32> to vector<8x32xf32>
    %120 = arith.mulf %117, %119 : vector<8x32xf32>
    %c0_62 = arith.constant 0 : index
    %c0_63 = arith.constant 0 : index
    %121 = vector.load %arg21[%c0_62, %c0_63] : memref<1x32xf32, #tpu.memory_space<vmem>>, vector<1x32xf32>
    %122 = vector.broadcast %121 : vector<1x32xf32> to vector<8x32xf32>
    %123 = arith.addf %120, %122 : vector<8x32xf32>
    %124 = arith.truncf %123 : vector<8x32xf32> to vector<8x32xbf16>
    %c0_64 = arith.constant 0 : index
    %c0_65 = arith.constant 0 : index
    %125 = vector.load %arg10[%c0_64, %c0_65] : memref<32x32xbf16, #tpu.memory_space<vmem>>, vector<32x32xbf16>
    %cst_66 = arith.constant dense<0.000000e+00> : vector<8x32xf32>
    %126 = tpu.matmul %124, %125, %cst_66 {dimension_numbers = #tpu.dot_dimension_numbers<[1], [0], [0], [1], [0, 0, 1, 1], [], []>} : vector<8x32xbf16>, vector<32x32xbf16>, vector<8x32xf32> -> vector<8x32xf32>
    %c0_67 = arith.constant 0 : index
    %c0_68 = arith.constant 0 : index
    %127 = vector.load %arg11[%c0_67, %c0_68] : memref<1x32xf32, #tpu.memory_space<vmem>>, vector<1x32xf32>
    %128 = vector.broadcast %127 : vector<1x32xf32> to vector<8x32xf32>
    %129 = arith.addf %126, %128 : vector<8x32xf32>
    %cst_69 = arith.constant 0.353553385 : f32
    %130 = vector.broadcast %cst_69 : f32 to vector<8x32xf32>
    %131 = arith.mulf %129, %130 : vector<8x32xf32>
    %132 = arith.truncf %131 : vector<8x32xf32> to vector<8x32xbf16>
    %133 = vector.extract_strided_slice %132 {offsets = [0, 0], sizes = [8, 8], strides = [1, 1]} : vector<8x32xbf16> to vector<8x8xbf16>
    %c0_70 = arith.constant 0 : index
    %c0_71 = arith.constant 0 : index
    %134 = vector.load %arg29[%c0_70, %c0_71] : memref<32x8xbf16, #tpu.memory_space<vmem>>, vector<8x8xbf16>
    %cst_72 = arith.constant dense<0.000000e+00> : vector<8x8xf32>
    %135 = tpu.matmul %133, %134, %cst_72 {dimension_numbers = #tpu.dot_dimension_numbers<[1], [0], [0], [1], [0, 0, 1, 1], [], []>} : vector<8x8xbf16>, vector<8x8xbf16>, vector<8x8xf32> -> vector<8x8xf32>
    %cst_73 = arith.constant dense<0xFF800000> : vector<8xf32>
    %136 = vector.multi_reduction <maximumf>, %135, %cst_73 [1] : vector<8x8xf32> to vector<8xf32>
    %137 = vector.shape_cast %136 : vector<8xf32> to vector<8x1xf32>
    %138 = vector.broadcast %137 : vector<8x1xf32> to vector<8x8xf32>
    %139 = arith.subf %135, %138 : vector<8x8xf32>
    %140 = math.exp %139 : vector<8x8xf32>
    %cst_74 = arith.constant dense<0.000000e+00> : vector<8xf32>
    %141 = vector.multi_reduction <add>, %140, %cst_74 [1] : vector<8x8xf32> to vector<8xf32>
    %142 = vector.shape_cast %141 : vector<8xf32> to vector<8x1xf32>
    %cst_75 = arith.constant 1.000000e+00 : f32
    %143 = vector.broadcast %cst_75 : f32 to vector<8x1xf32>
    %144 = arith.divf %143, %142 : vector<8x1xf32>
    %145 = vector.broadcast %144 : vector<8x1xf32> to vector<8x8xf32>
    %146 = arith.mulf %140, %145 : vector<8x8xf32>
    %147 = arith.truncf %146 : vector<8x8xf32> to vector<8x8xbf16>
    %c0_76 = arith.constant 0 : index
    %c0_77 = arith.constant 0 : index
    %148 = vector.load %arg30[%c0_76, %c0_77] : memref<8x32xbf16, #tpu.memory_space<vmem>>, vector<8x8xbf16>
    %cst_78 = arith.constant dense<0.000000e+00> : vector<8x8xf32>
    %149 = tpu.matmul %147, %148, %cst_78 {dimension_numbers = #tpu.dot_dimension_numbers<[1], [0], [0], [1], [0, 0, 1, 1], [], []>} : vector<8x8xbf16>, vector<8x8xbf16>, vector<8x8xf32> -> vector<8x8xf32>
    %150 = arith.truncf %149 : vector<8x8xf32> to vector<8x8xbf16>
    %c0_79 = arith.constant 0 : index
    %c0_80 = arith.constant 0 : index
    %151 = vector.load %arg31[%c0_79, %c0_80] : memref<8x32xbf16, #tpu.memory_space<vmem>>, vector<8x8xbf16>
    tpu.vector_store %arg31[%c0_79, %c0_80], %150 {strides = array<i32>} : memref<8x32xbf16, #tpu.memory_space<vmem>>, vector<8x8xbf16>,
    %152 = vector.extract_strided_slice %132 {offsets = [0, 8], sizes = [8, 8], strides = [1, 1]} : vector<8x32xbf16> to vector<8x8xbf16>
    %c8_81 = arith.constant 8 : index
    %c0_82 = arith.constant 0 : index
    %153 = vector.load %arg29[%c8_81, %c0_82] : memref<32x8xbf16, #tpu.memory_space<vmem>>, vector<8x8xbf16>
    %cst_83 = arith.constant dense<0.000000e+00> : vector<8x8xf32>
    %154 = tpu.matmul %152, %153, %cst_83 {dimension_numbers = #tpu.dot_dimension_numbers<[1], [0], [0], [1], [0, 0, 1, 1], [], []>} : vector<8x8xbf16>, vector<8x8xbf16>, vector<8x8xf32> -> vector<8x8xf32>
    %cst_84 = arith.constant dense<0xFF800000> : vector<8xf32>
    %155 = vector.multi_reduction <maximumf>, %154, %cst_84 [1] : vector<8x8xf32> to vector<8xf32>
    %156 = vector.shape_cast %155 : vector<8xf32> to vector<8x1xf32>
    %157 = vector.broadcast %156 : vector<8x1xf32> to vector<8x8xf32>
    %158 = arith.subf %154, %157 : vector<8x8xf32>
    %159 = math.exp %158 : vector<8x8xf32>
    %cst_85 = arith.constant dense<0.000000e+00> : vector<8xf32>
    %160 = vector.multi_reduction <add>, %159, %cst_85 [1] : vector<8x8xf32> to vector<8xf32>
    %161 = vector.shape_cast %160 : vector<8xf32> to vector<8x1xf32>
    %cst_86 = arith.constant 1.000000e+00 : f32
    %162 = vector.broadcast %cst_86 : f32 to vector<8x1xf32>
    %163 = arith.divf %162, %161 : vector<8x1xf32>
    %164 = vector.broadcast %163 : vector<8x1xf32> to vector<8x8xf32>
    %165 = arith.mulf %159, %164 : vector<8x8xf32>
    %166 = arith.truncf %165 : vector<8x8xf32> to vector<8x8xbf16>
    %c0_87 = arith.constant 0 : index
    %c8_88 = arith.constant 8 : index
    %167 = vector.load %arg30[%c0_87, %c8_88] : memref<8x32xbf16, #tpu.memory_space<vmem>>, vector<8x8xbf16>
    %cst_89 = arith.constant dense<0.000000e+00> : vector<8x8xf32>
    %168 = tpu.matmul %166, %167, %cst_89 {dimension_numbers = #tpu.dot_dimension_numbers<[1], [0], [0], [1], [0, 0, 1, 1], [], []>} : vector<8x8xbf16>, vector<8x8xbf16>, vector<8x8xf32> -> vector<8x8xf32>
    %169 = arith.truncf %168 : vector<8x8xf32> to vector<8x8xbf16>
    %c0_90 = arith.constant 0 : index
    %c8_91 = arith.constant 8 : index
    %170 = vector.load %arg31[%c0_90, %c8_91] : memref<8x32xbf16, #tpu.memory_space<vmem>>, vector<8x8xbf16>
    tpu.vector_store %arg31[%c0_90, %c8_91], %169 {strides = array<i32>} : memref<8x32xbf16, #tpu.memory_space<vmem>>, vector<8x8xbf16>,
    %171 = vector.extract_strided_slice %132 {offsets = [0, 16], sizes = [8, 8], strides = [1, 1]} : vector<8x32xbf16> to vector<8x8xbf16>
    %c16_92 = arith.constant 16 : index
    %c0_93 = arith.constant 0 : index
    %172 = vector.load %arg29[%c16_92, %c0_93] : memref<32x8xbf16, #tpu.memory_space<vmem>>, vector<8x8xbf16>
    %cst_94 = arith.constant dense<0.000000e+00> : vector<8x8xf32>
    %173 = tpu.matmul %171, %172, %cst_94 {dimension_numbers = #tpu.dot_dimension_numbers<[1], [0], [0], [1], [0, 0, 1, 1], [], []>} : vector<8x8xbf16>, vector<8x8xbf16>, vector<8x8xf32> -> vector<8x8xf32>
    %cst_95 = arith.constant dense<0xFF800000> : vector<8xf32>
    %174 = vector.multi_reduction <maximumf>, %173, %cst_95 [1] : vector<8x8xf32> to vector<8xf32>
    %175 = vector.shape_cast %174 : vector<8xf32> to vector<8x1xf32>
    %176 = vector.broadcast %175 : vector<8x1xf32> to vector<8x8xf32>
    %177 = arith.subf %173, %176 : vector<8x8xf32>
    %178 = math.exp %177 : vector<8x8xf32>
    %cst_96 = arith.constant dense<0.000000e+00> : vector<8xf32>
    %179 = vector.multi_reduction <add>, %178, %cst_96 [1] : vector<8x8xf32> to vector<8xf32>
    %180 = vector.shape_cast %179 : vector<8xf32> to vector<8x1xf32>
    %cst_97 = arith.constant 1.000000e+00 : f32
    %181 = vector.broadcast %cst_97 : f32 to vector<8x1xf32>
    %182 = arith.divf %181, %180 : vector<8x1xf32>
    %183 = vector.broadcast %182 : vector<8x1xf32> to vector<8x8xf32>
    %184 = arith.mulf %178, %183 : vector<8x8xf32>
    %185 = arith.truncf %184 : vector<8x8xf32> to vector<8x8xbf16>
    %c0_98 = arith.constant 0 : index
    %c16_99 = arith.constant 16 : index
    %186 = vector.load %arg30[%c0_98, %c16_99] : memref<8x32xbf16, #tpu.memory_space<vmem>>, vector<8x8xbf16>
    %cst_100 = arith.constant dense<0.000000e+00> : vector<8x8xf32>
    %187 = tpu.matmul %185, %186, %cst_100 {dimension_numbers = #tpu.dot_dimension_numbers<[1], [0], [0], [1], [0, 0, 1, 1], [], []>} : vector<8x8xbf16>, vector<8x8xbf16>, vector<8x8xf32> -> vector<8x8xf32>
    %188 = arith.truncf %187 : vector<8x8xf32> to vector<8x8xbf16>
    %c0_101 = arith.constant 0 : index
    %c16_102 = arith.constant 16 : index
    %189 = vector.load %arg31[%c0_101, %c16_102] : memref<8x32xbf16, #tpu.memory_space<vmem>>, vector<8x8xbf16>
    tpu.vector_store %arg31[%c0_101, %c16_102], %188 {strides = array<i32>} : memref<8x32xbf16, #tpu.memory_space<vmem>>, vector<8x8xbf16>,
    %190 = vector.extract_strided_slice %132 {offsets = [0, 24], sizes = [8, 8], strides = [1, 1]} : vector<8x32xbf16> to vector<8x8xbf16>
    %c24_103 = arith.constant 24 : index
    %c0_104 = arith.constant 0 : index
    %191 = vector.load %arg29[%c24_103, %c0_104] : memref<32x8xbf16, #tpu.memory_space<vmem>>, vector<8x8xbf16>
    %cst_105 = arith.constant dense<0.000000e+00> : vector<8x8xf32>
    %192 = tpu.matmul %190, %191, %cst_105 {dimension_numbers = #tpu.dot_dimension_numbers<[1], [0], [0], [1], [0, 0, 1, 1], [], []>} : vector<8x8xbf16>, vector<8x8xbf16>, vector<8x8xf32> -> vector<8x8xf32>
    %cst_106 = arith.constant dense<0xFF800000> : vector<8xf32>
    %193 = vector.multi_reduction <maximumf>, %192, %cst_106 [1] : vector<8x8xf32> to vector<8xf32>
    %194 = vector.shape_cast %193 : vector<8xf32> to vector<8x1xf32>
    %195 = vector.broadcast %194 : vector<8x1xf32> to vector<8x8xf32>
    %196 = arith.subf %192, %195 : vector<8x8xf32>
    %197 = math.exp %196 : vector<8x8xf32>
    %cst_107 = arith.constant dense<0.000000e+00> : vector<8xf32>
    %198 = vector.multi_reduction <add>, %197, %cst_107 [1] : vector<8x8xf32> to vector<8xf32>
    %199 = vector.shape_cast %198 : vector<8xf32> to vector<8x1xf32>
    %cst_108 = arith.constant 1.000000e+00 : f32
    %200 = vector.broadcast %cst_108 : f32 to vector<8x1xf32>
    %201 = arith.divf %200, %199 : vector<8x1xf32>
    %202 = vector.broadcast %201 : vector<8x1xf32> to vector<8x8xf32>
    %203 = arith.mulf %197, %202 : vector<8x8xf32>
    %204 = arith.truncf %203 : vector<8x8xf32> to vector<8x8xbf16>
    %c0_109 = arith.constant 0 : index
    %c24_110 = arith.constant 24 : index
    %205 = vector.load %arg30[%c0_109, %c24_110] : memref<8x32xbf16, #tpu.memory_space<vmem>>, vector<8x8xbf16>
    %cst_111 = arith.constant dense<0.000000e+00> : vector<8x8xf32>
    %206 = tpu.matmul %204, %205, %cst_111 {dimension_numbers = #tpu.dot_dimension_numbers<[1], [0], [0], [1], [0, 0, 1, 1], [], []>} : vector<8x8xbf16>, vector<8x8xbf16>, vector<8x8xf32> -> vector<8x8xf32>
    %207 = arith.truncf %206 : vector<8x8xf32> to vector<8x8xbf16>
    %c0_112 = arith.constant 0 : index
    %c24_113 = arith.constant 24 : index
    %208 = vector.load %arg31[%c0_112, %c24_113] : memref<8x32xbf16, #tpu.memory_space<vmem>>, vector<8x8xbf16>
    tpu.vector_store %arg31[%c0_112, %c24_113], %207 {strides = array<i32>} : memref<8x32xbf16, #tpu.memory_space<vmem>>, vector<8x8xbf16>,
    %c0_114 = arith.constant 0 : index
    %c0_115 = arith.constant 0 : index
    %209 = vector.load %arg31[%c0_114, %c0_115] : memref<8x32xbf16, #tpu.memory_space<vmem>>, vector<8x32xbf16>
    %c0_116 = arith.constant 0 : index
    %c0_117 = arith.constant 0 : index
    %210 = vector.load %arg14[%c0_116, %c0_117] : memref<32x32xbf16, #tpu.memory_space<vmem>>, vector<32x32xbf16>
    %cst_118 = arith.constant dense<0.000000e+00> : vector<8x32xf32>
    %211 = tpu.matmul %209, %210, %cst_118 {dimension_numbers = #tpu.dot_dimension_numbers<[1], [0], [0], [1], [0, 0, 1, 1], [], []>} : vector<8x32xbf16>, vector<32x32xbf16>, vector<8x32xf32> -> vector<8x32xf32>
    %c0_119 = arith.constant 0 : index
    %c0_120 = arith.constant 0 : index
    %212 = vector.load %arg15[%c0_119, %c0_120] : memref<1x32xf32, #tpu.memory_space<vmem>>, vector<1x32xf32>
    %213 = vector.broadcast %212 : vector<1x32xf32> to vector<8x32xf32>
    %214 = arith.addf %211, %213 : vector<8x32xf32>
    %215 = arith.addf %123, %214 : vector<8x32xf32>
    %cst_121 = arith.constant dense<0.000000e+00> : vector<8xf32>
    %216 = vector.multi_reduction <add>, %215, %cst_121 [1] : vector<8x32xf32> to vector<8xf32>
    %217 = vector.shape_cast %216 : vector<8xf32> to vector<8x1xf32>
    %cst_122 = arith.constant 3.200000e+01 : f32
    %218 = vector.broadcast %cst_122 : f32 to vector<8x1xf32>
    %219 = arith.divf %217, %218 : vector<8x1xf32>
    %220 = vector.broadcast %219 : vector<8x1xf32> to vector<8x32xf32>
    %221 = arith.subf %215, %220 : vector<8x32xf32>
    %222 = arith.mulf %221, %221 : vector<8x32xf32>
    %cst_123 = arith.constant dense<0.000000e+00> : vector<8xf32>
    %223 = vector.multi_reduction <add>, %222, %cst_123 [1] : vector<8x32xf32> to vector<8xf32>
    %224 = vector.shape_cast %223 : vector<8xf32> to vector<8x1xf32>
    %cst_124 = arith.constant 3.200000e+01 : f32
    %225 = vector.broadcast %cst_124 : f32 to vector<8x1xf32>
    %226 = arith.divf %224, %225 : vector<8x1xf32>
    %227 = vector.broadcast %219 : vector<8x1xf32> to vector<8x32xf32>
    %228 = arith.subf %215, %227 : vector<8x32xf32>
    %cst_125 = arith.constant 9.99999974E-6 : f32
    %229 = vector.broadcast %cst_125 : f32 to vector<8x1xf32>
    %230 = arith.addf %226, %229 : vector<8x1xf32>
    %231 = math.rsqrt %230 : vector<8x1xf32>
    %232 = vector.broadcast %231 : vector<8x1xf32> to vector<8x32xf32>
    %233 = arith.mulf %228, %232 : vector<8x32xf32>
    %c0_126 = arith.constant 0 : index
    %c0_127 = arith.constant 0 : index
    %234 = vector.load %arg22[%c0_126, %c0_127] : memref<1x32xf32, #tpu.memory_space<vmem>>, vector<1x32xf32>
    %235 = vector.broadcast %234 : vector<1x32xf32> to vector<8x32xf32>
    %236 = arith.mulf %233, %235 : vector<8x32xf32>
    %c0_128 = arith.constant 0 : index
    %c0_129 = arith.constant 0 : index
    %237 = vector.load %arg23[%c0_128, %c0_129] : memref<1x32xf32, #tpu.memory_space<vmem>>, vector<1x32xf32>
    %238 = vector.broadcast %237 : vector<1x32xf32> to vector<8x32xf32>
    %239 = arith.addf %236, %238 : vector<8x32xf32>
    %240 = arith.truncf %239 : vector<8x32xf32> to vector<8x32xbf16>
    %c0_130 = arith.constant 0 : index
    %c0_131 = arith.constant 0 : index
    %241 = vector.load %arg16[%c0_130, %c0_131] : memref<32x64xbf16, #tpu.memory_space<vmem>>, vector<32x64xbf16>
    %cst_132 = arith.constant dense<0.000000e+00> : vector<8x64xf32>
    %242 = tpu.matmul %240, %241, %cst_132 {dimension_numbers = #tpu.dot_dimension_numbers<[1], [0], [0], [1], [0, 0, 1, 1], [], []>} : vector<8x32xbf16>, vector<32x64xbf16>, vector<8x64xf32> -> vector<8x64xf32>
    %c0_133 = arith.constant 0 : index
    %c0_134 = arith.constant 0 : index
    %243 = vector.load %arg17[%c0_133, %c0_134] : memref<1x64xf32, #tpu.memory_space<vmem>>, vector<1x64xf32>
    %244 = vector.broadcast %243 : vector<1x64xf32> to vector<8x64xf32>
    %245 = arith.addf %242, %244 : vector<8x64xf32>
    %cst_135 = arith.constant 0.000000e+00 : f32
    %246 = vector.broadcast %cst_135 : f32 to vector<8x64xf32>
    %247 = arith.maximumf %245, %246 : vector<8x64xf32>
    %248 = arith.truncf %247 : vector<8x64xf32> to vector<8x64xbf16>
    %c0_136 = arith.constant 0 : index
    %c0_137 = arith.constant 0 : index
    %249 = vector.load %arg18[%c0_136, %c0_137] : memref<64x32xbf16, #tpu.memory_space<vmem>>, vector<64x32xbf16>
    %cst_138 = arith.constant dense<0.000000e+00> : vector<8x32xf32>
    %250 = tpu.matmul %248, %249, %cst_138 {dimension_numbers = #tpu.dot_dimension_numbers<[1], [0], [0], [1], [0, 0, 1, 1], [], []>} : vector<8x64xbf16>, vector<64x32xbf16>, vector<8x32xf32> -> vector<8x32xf32>
    %251 = arith.addf %239, %250 : vector<8x32xf32>
    %c0_139 = arith.constant 0 : index
    %c0_140 = arith.constant 0 : index
    %252 = vector.load %arg19[%c0_139, %c0_140] : memref<1x32xf32, #tpu.memory_space<vmem>>, vector<1x32xf32>
    %253 = vector.broadcast %252 : vector<1x32xf32> to vector<8x32xf32>
    %254 = arith.addf %251, %253 : vector<8x32xf32>
    %cst_141 = arith.constant dense<0.000000e+00> : vector<8xf32>
    %255 = vector.multi_reduction <add>, %254, %cst_141 [1] : vector<8x32xf32> to vector<8xf32>
    %256 = vector.shape_cast %255 : vector<8xf32> to vector<8x1xf32>
    %cst_142 = arith.constant 3.200000e+01 : f32
    %257 = vector.broadcast %cst_142 : f32 to vector<8x1xf32>
    %258 = arith.divf %256, %257 : vector<8x1xf32>
    %259 = vector.broadcast %258 : vector<8x1xf32> to vector<8x32xf32>
    %260 = arith.subf %254, %259 : vector<8x32xf32>
    %261 = arith.mulf %260, %260 : vector<8x32xf32>
    %cst_143 = arith.constant dense<0.000000e+00> : vector<8xf32>
    %262 = vector.multi_reduction <add>, %261, %cst_143 [1] : vector<8x32xf32> to vector<8xf32>
    %263 = vector.shape_cast %262 : vector<8xf32> to vector<8x1xf32>
    %cst_144 = arith.constant 3.200000e+01 : f32
    %264 = vector.broadcast %cst_144 : f32 to vector<8x1xf32>
    %265 = arith.divf %263, %264 : vector<8x1xf32>
    %266 = vector.broadcast %258 : vector<8x1xf32> to vector<8x32xf32>
    %267 = arith.subf %254, %266 : vector<8x32xf32>
    %cst_145 = arith.constant 9.99999974E-6 : f32
    %268 = vector.broadcast %cst_145 : f32 to vector<8x1xf32>
    %269 = arith.addf %265, %268 : vector<8x1xf32>
    %270 = math.rsqrt %269 : vector<8x1xf32>
    %271 = vector.broadcast %270 : vector<8x1xf32> to vector<8x32xf32>
    %272 = arith.mulf %267, %271 : vector<8x32xf32>
    %c0_146 = arith.constant 0 : index
    %c0_147 = arith.constant 0 : index
    %273 = vector.load %arg24[%c0_146, %c0_147] : memref<1x32xf32, #tpu.memory_space<vmem>>, vector<1x32xf32>
    %274 = vector.broadcast %273 : vector<1x32xf32> to vector<8x32xf32>
    %275 = arith.mulf %272, %274 : vector<8x32xf32>
    %c0_148 = arith.constant 0 : index
    %c0_149 = arith.constant 0 : index
    %276 = vector.load %arg25[%c0_148, %c0_149] : memref<1x32xf32, #tpu.memory_space<vmem>>, vector<1x32xf32>
    %277 = vector.broadcast %276 : vector<1x32xf32> to vector<8x32xf32>
    %278 = arith.addf %275, %277 : vector<8x32xf32>
    %c0_150 = arith.constant 0 : index
    %c0_151 = arith.constant 0 : index
    %c0_152 = arith.constant 0 : index
    %279 = vector.load %arg26[%c0_150, %c0_151, %c0_152] : memref<1x8x32xf32, #tpu.memory_space<vmem>>, vector<1x8x32xf32>
    %280 = vector.shape_cast %279 : vector<1x8x32xf32> to vector<8x32xf32>
    %281 = vector.shape_cast %278 : vector<8x32xf32> to vector<1x8x32xf32>
    tpu.vector_store %arg26[%c0_150, %c0_151, %c0_152], %281 {strides = array<i32>} : memref<1x8x32xf32, #tpu.memory_space<vmem>>, vector<1x8x32xf32>,
    return
  }
  func.func @transform_0(%arg0: i32, %arg1: i32) -> (i32, i32, i32) {
    %c0_i32 = arith.constant 0 : i32
    %c0_i32_0 = arith.constant 0 : i32
    %c0_i32_1 = arith.constant 0 : i32
    return %arg0, %c0_i32, %c0_i32_0 : i32, i32, i32
  }
  func.func @transform_1(%arg0: i32, %arg1: i32) -> (i32, i32, i32) {
    %c0_i32 = arith.constant 0 : i32
    %c0_i32_0 = arith.constant 0 : i32
    %c0_i32_1 = arith.constant 0 : i32
    return %arg0, %c0_i32, %c0_i32_0 : i32, i32, i32
  }
  func.func @transform_2(%arg0: i32, %arg1: i32) -> (i32, i32) {
    %c0_i32 = arith.constant 0 : i32
    %c0_i32_0 = arith.constant 0 : i32
    %c0_i32_1 = arith.constant 0 : i32
    return %c0_i32, %c0_i32_0 : i32, i32
  }
  func.func @transform_3(%arg0: i32, %arg1: i32) -> (i32, i32) {
    %c0_i32 = arith.constant 0 : i32
    %c0_i32_0 = arith.constant 0 : i32
    %c0_i32_1 = arith.constant 0 : i32
    return %c0_i32, %c0_i32_0 : i32, i32
  }
  func.func @transform_4(%arg0: i32, %arg1: i32) -> (i32, i32) {
    %c0_i32 = arith.constant 0 : i32
    %c0_i32_0 = arith.constant 0 : i32
    %c0_i32_1 = arith.constant 0 : i32
    return %c0_i32, %c0_i32_0 : i32, i32
  }
  func.func @transform_5(%arg0: i32, %arg1: i32) -> (i32, i32) {
    %c0_i32 = arith.constant 0 : i32
    %c0_i32_0 = arith.constant 0 : i32
    %c0_i32_1 = arith.constant 0 : i32
    return %c0_i32, %c0_i32_0 : i32, i32
  }
  func.func @transform_6(%arg0: i32, %arg1: i32) -> (i32, i32) {
    %c0_i32 = arith.constant 0 : i32
    %c0_i32_0 = arith.constant 0 : i32
    %c0_i32_1 = arith.constant 0 : i32
    return %c0_i32, %c0_i32_0 : i32, i32
  }
  func.func @transform_7(%arg0: i32, %arg1: i32) -> (i32, i32) {
    %c0_i32 = arith.constant 0 : i32
    %c0_i32_0 = arith.constant 0 : i32
    %c0_i32_1 = arith.constant 0 : i32
    return %c0_i32, %c0_i32_0 : i32, i32
  }
  func.func @transform_8(%arg0: i32, %arg1: i32) -> (i32, i32) {
    %c0_i32 = arith.constant 0 : i32
    %c0_i32_0 = arith.constant 0 : i32
    %c0_i32_1 = arith.constant 0 : i32
    return %c0_i32, %c0_i32_0 : i32, i32
  }
  func.func @transform_9(%arg0: i32, %arg1: i32) -> (i32, i32) {
    %c0_i32 = arith.constant 0 : i32
    %c0_i32_0 = arith.constant 0 : i32
    %c0_i32_1 = arith.constant 0 : i32
    return %c0_i32, %c0_i32_0 : i32, i32
  }
  func.func @transform_10(%arg0: i32, %arg1: i32) -> (i32, i32) {
    %c0_i32 = arith.constant 0 : i32
    %c0_i32_0 = arith.constant 0 : i32
    %c0_i32_1 = arith.constant 0 : i32
    return %c0_i32, %c0_i32_0 : i32, i32
  }
  func.func @transform_11(%arg0: i32, %arg1: i32) -> (i32, i32) {
    %c0_i32 = arith.constant 0 : i32
    %c0_i32_0 = arith.constant 0 : i32
    %c0_i32_1 = arith.constant 0 : i32
    return %c0_i32, %c0_i32_0 : i32, i32
  }
  func.func @transform_12(%arg0: i32, %arg1: i32) -> (i32, i32) {
    %c0_i32 = arith.constant 0 : i32
    %c0_i32_0 = arith.constant 0 : i32
    %c0_i32_1 = arith.constant 0 : i32
    return %c0_i32, %c0_i32_0 : i32, i32
  }
  func.func @transform_13(%arg0: i32, %arg1: i32) -> (i32, i32) {
    %c0_i32 = arith.constant 0 : i32
    %c0_i32_0 = arith.constant 0 : i32
    %c0_i32_1 = arith.constant 0 : i32
    return %c0_i32, %c0_i32_0 : i32, i32
  }
  func.func @transform_14(%arg0: i32, %arg1: i32) -> (i32, i32) {
    %c0_i32 = arith.constant 0 : i32
    %c0_i32_0 = arith.constant 0 : i32
    %c0_i32_1 = arith.constant 0 : i32
    return %c0_i32, %c0_i32_0 : i32, i32
  }
  func.func @transform_15(%arg0: i32, %arg1: i32) -> (i32, i32) {
    %c0_i32 = arith.constant 0 : i32
    %c0_i32_0 = arith.constant 0 : i32
    %c0_i32_1 = arith.constant 0 : i32
    return %c0_i32, %c0_i32_0 : i32, i32
  }
  func.func @transform_16(%arg0: i32, %arg1: i32) -> (i32, i32) {
    %c0_i32 = arith.constant 0 : i32
    %c0_i32_0 = arith.constant 0 : i32
    %c0_i32_1 = arith.constant 0 : i32
    return %c0_i32, %c0_i32_0 : i32, i32
  }
  func.func @transform_17(%arg0: i32, %arg1: i32) -> (i32, i32) {
    %c0_i32 = arith.constant 0 : i32
    %c0_i32_0 = arith.constant 0 : i32
    %c0_i32_1 = arith.constant 0 : i32
    return %c0_i32, %c0_i32_0 : i32, i32
  }
  func.func @transform_18(%arg0: i32, %arg1: i32) -> (i32, i32) {
    %c0_i32 = arith.constant 0 : i32
    %c0_i32_0 = arith.constant 0 : i32
    %c0_i32_1 = arith.constant 0 : i32
    return %c0_i32, %c0_i32_0 : i32, i32
  }
  func.func @transform_19(%arg0: i32, %arg1: i32) -> (i32, i32) {
    %c0_i32 = arith.constant 0 : i32
    %c0_i32_0 = arith.constant 0 : i32
    %c0_i32_1 = arith.constant 0 : i32
    return %c0_i32, %c0_i32_0 : i32, i32
  }
  func.func @transform_20(%arg0: i32, %arg1: i32) -> (i32, i32) {
    %c0_i32 = arith.constant 0 : i32
    %c0_i32_0 = arith.constant 0 : i32
    %c0_i32_1 = arith.constant 0 : i32
    return %c0_i32, %c0_i32_0 : i32, i32
  }
  func.func @transform_21(%arg0: i32, %arg1: i32) -> (i32, i32) {
    %c0_i32 = arith.constant 0 : i32
    %c0_i32_0 = arith.constant 0 : i32
    %c0_i32_1 = arith.constant 0 : i32
    return %c0_i32, %c0_i32_0 : i32, i32
  }
  func.func @transform_22(%arg0: i32, %arg1: i32) -> (i32, i32) {
    %c0_i32 = arith.constant 0 : i32
    %c0_i32_0 = arith.constant 0 : i32
    %c0_i32_1 = arith.constant 0 : i32
    return %c0_i32, %c0_i32_0 : i32, i32
  }
  func.func @transform_23(%arg0: i32, %arg1: i32) -> (i32, i32) {
    %c0_i32 = arith.constant 0 : i32
    %c0_i32_0 = arith.constant 0 : i32
    %c0_i32_1 = arith.constant 0 : i32
    return %c0_i32, %c0_i32_0 : i32, i32
  }
  func.func @transform_24(%arg0: i32, %arg1: i32) -> (i32, i32, i32) {
    %c0_i32 = arith.constant 0 : i32
    %c0_i32_0 = arith.constant 0 : i32
    return %arg0, %arg1, %c0_i32 : i32, i32, i32
  }
}

</mosaic_0001>

<bundles_post_ra>
// kernel: tpu_custom_call.1
= control target key start
LH: loop header
LB: loop body
LE: loop exit
PB: predicated region body
PF: predicated region fallthrough
CT: control target
= control target key end

     0   :  { %s3324_s0 = inlined_call_operand.hbm [shape: bf16[2,8,32], index: 0, kind: input, shape index: {}]   ;;  %s3325_s1 = inlined_call_operand.hbm [shape: bf16[2,8,32], index: 1, kind: input, shape index: {}]   ;;  %s3326_s2 = inlined_call_operand.vmem [shape: bf16[32,32], index: 2, kind: input, shape index: {}]   ;;  %s3327_s3 = inlined_call_operand.vmem [shape: f32[1,32], index: 3, kind: input, shape index: {}]   ;;  %s3328_s4 = inlined_call_operand.vmem [shape: bf16[32,64], index: 4, kind: input, shape index: {}]   ;;  %s3329_s5 = inlined_call_operand.vmem [shape: f32[1,64], index: 5, kind: input, shape index: {}]   ;;  %s3330_s6 = inlined_call_operand.vmem [shape: bf16[32,32], index: 6, kind: input, shape index: {}]   ;;  %s3331_s7 = inlined_call_operand.vmem [shape: f32[1,32], index: 7, kind: input, shape index: {}]   ;;  %s3332_s8 = inlined_call_operand.hbm [shape: bf16[32,32], index: 8, kind: input, shape index: {}]   ;;  %s3333_s9 = inlined_call_operand.vmem [shape: f32[1,32], index: 9, kind: input, shape index: {}]   ;;  %s3334_s10 = inlined_call_operand.hbm [shape: bf16[32,64], index: 10, kind: input, shape index: {}]   ;;  %s3335_s11 = inlined_call_operand.vmem [shape: f32[1,64], index: 11, kind: input, shape index: {}]   ;;  %s3336_s12 = inlined_call_operand.hbm [shape: bf16[32,32], index: 12, kind: input, shape index: {}]   ;;  %s3337_s13 = inlined_call_operand.vmem [shape: f32[1,32], index: 13, kind: input, shape index: {}]   ;;  %s3338_s14 = inlined_call_operand.hbm [shape: bf16[32,64], index: 14, kind: input, shape index: {}]   ;;  %s3339_s15 = inlined_call_operand.vmem [shape: f32[1,64], index: 15, kind: input, shape index: {}]   ;;  %s3340_s16 = inlined_call_operand.vmem [shape: bf16[64,32], index: 16, kind: input, shape index: {}]   ;;  %s3341_s17 = inlined_call_operand.vmem [shape: f32[1,32], index: 17, kind: input, shape index: {}]   ;;  %s3342_s18 = inlined_call_operand.vmem [shape: f32[1,32], index: 18, kind: input, shape index: {}]   ;;  %s3343_s19 = inlined_call_operand.vmem [shape: f32[1,32], index: 19, kind: input, shape index: {}]   ;;  %s3344_s20 = inlined_call_operand.vmem [shape: f32[1,32], index: 20, kind: input, shape index: {}]   ;;  %s3345_s21 = inlined_call_operand.vmem [shape: f32[1,32], index: 21, kind: input, shape index: {}]   ;;  %s3346_s22 = inlined_call_operand.vmem [shape: f32[1,32], index: 22, kind: input, shape index: {}]   ;;  %s3347_s23 = inlined_call_operand.vmem [shape: f32[1,32], index: 23, kind: input, shape index: {}]   ;;  %s3348_s24 = inlined_call_operand.hbm [shape: f32[2,8,32], index: 24, kind: output, shape index: {}]  }
   0x1   :  { %3360 = sst [smem:[#allocation33_spill]] %s3324_s0 }
   0x2   :  { %3361 = sst [smem:[#allocation34_spill]] %s3325_s1 }
   0x3   :  { %3362 = sst [smem:[#allocation35_spill]] %s3326_s2 }
   0x4   :  { %3363 = sst [smem:[#allocation36_spill]] %s3327_s3 }
   0x5   :  { %3364 = sst [smem:[#allocation37_spill]] %s3328_s4 }
   0x6   :  { %3365 = sst [smem:[#allocation38_spill]] %s3329_s5 }
   0x7   :  { %3366 = sst [smem:[#allocation39_spill]] %s3330_s6 }
   0x8   :  { %3367 = sst [smem:[#allocation40_spill]] %s3331_s7 }
   0x9   :  { %3368 = sst [smem:[#allocation41_spill]] %s3332_s8 }
   0xa   :  { %3369 = sst [smem:[#allocation42_spill]] %s3334_s10 }
   0xb   :  { %3370 = sst [smem:[#allocation43_spill]] %s3336_s12 }
   0xc   :  { %3371 = sst [smem:[#allocation44_spill]] %s3338_s14 }
   0xd   :  { %3372 = sst [smem:[#allocation45_spill]] %s3339_s15 }
   0xe   :  { %3373 = sst [smem:[#allocation46_spill]] %s3341_s17 }
   0xf   :  { %3374 = sst [smem:[#allocation47_spill]] %s3344_s20 }
  0x10   :  { %3375 = sst [smem:[#allocation48_spill]] %s3345_s21 }
  0x11   :  { %3376 = sst [smem:[#allocation49_spill]] %s3346_s22 }
  0x12   :  { %3377 = sst [smem:[#allocation50_spill]] %s3347_s23 }
  0x13   :  { %3378 = sst [smem:[#allocation51_spill]] %s3348_s24 }
  0x14   :  { %29 = vsyncpa [#allocation8], 0 }
  0x15   :  { %31 = vsyncpa [#allocation8 + $0x1], 0 }
  0x16   :  { %32 = vsyncpa [#allocation11], 0 }
  0x17   :  { %34 = vsyncpa [#allocation11 + $0x1], 0 }
  0x18   :  { %35 = vsyncpa [#allocation14], 0 }
  0x19   :  { %36 = vsyncpa [#allocation17], 0 }
  0x1a   :  { %37 = vsyncpa [#allocation9], 0 }
  0x1b   :  { %39 = vsyncpa [#allocation9 + $0x1], 0  ;;  %s2918_s5 = smov 0   ;;  %s2920_s26 = smov 0  }
  0x1c   :  { %s2922_s27 = smov 0   ;;  %s2924_s28 = smov 0  }
  0x1d   :  { %s2926_s6 = smov 0   ;;  %s2928_s2 = smov 0  }
  0x1e LB: > { %3379 = sst [smem:[#allocation25_spill]] %s2757_s5  ;;  %s2949_s29 = sadd.s32 4294967295, %s2777_s2   ;;  %s2777_s2 = sphi %s2928_s2, %s45_s2   ;;  %s2773_s6 = sphi %s2926_s6, %s3420_s6   ;;  %s2769_s28 = sphi %s2924_s28, %s3419_s28   ;;  %s2765_s27 = sphi %s2922_s27, %s3418_s27   ;;  %s2761_s26 = sphi %s2920_s26, %s3422_s26   ;;  %s2757_s5 = sphi %s2918_s5, %s3421_s5  }
  0x1f   : > { %3380 = sst [smem:[#allocation26_spill]] %s2765_s27  ;;  %p2190_p0 = scmp.ge.s32.totalorder %s2777_s2, 1 }
  0x20   : > { %3381 = sst [smem:[#allocation27_spill]] %s2769_s28  ;;  %p78_p1 = scmp.eq.s32.totalorder %s2949_s29, 0 }
  0x21   : > { %3382 = sst [smem:[#allocation28_spill]] %s2773_s6  ;;  %p604_p2 = scmp.lt.s32.totalorder %s2777_s2, 3 }
  0x22   : > { %s3383_s30 = sld [smem:[#allocation41_spill]]  ;;  %s2779_s8 = smov [#allocation12]  }
  0x23   : > { %p2957_p3 = pnand %p2190_p0, %p604_p2  ;;  %s635_s4 = sshll.u32 %s2779_s8, 4  ;;  %s636_s4 = int_to_ptr.vmem [resolvable:$true] %s635_s4 }
  0x24   : > { %p2195_p6 = scmp.ge.s32.totalorder %s2777_s2, 2  ;;  %s3386_s10 = sld [smem:[#allocation42_spill]] }
  0x25   : > { %p2348_p4 = pneg %p2957_p3  ;;  %s2780_s23 = smov 64  }
  0x26   : > { %s2781_s24 = smov 4   ;;  %s2782_s8 = smov [#allocation13]  }
  0x27   : > { %p2965_p5 = pnand %p2348_p4, %p78_p1  ;;  %s652_s22 = sshll.u32 %s2782_s8, 4  ;;  %s653_s22 = int_to_ptr.vmem [resolvable:$true] %s652_s22 }
  0x28   : > { %s633_s3 = sshll.u32 %s3383_s30, 4  ;;  %s3387_s12 = sld [smem:[#allocation43_spill]]  ;;  %s634_s3 = int_to_ptr.hbm [resolvable:$true] %s633_s3 }
  0x29   : > { %2351 = dma.hbm_to_vmem [thread:$0]  (!%p2965_p5), %s634_s3, 256, %s636_s4, [#allocation11], %s2780_s23, %s2780_s23, %s2781_s24  }
  0x2a   : > { %s650_s30 = sshll.u32 %s3386_s10, 4  ;;  %s3388_s14 = sld [smem:[#allocation44_spill]]  ;;  %s651_s30 = int_to_ptr.hbm [resolvable:$true] %s650_s30 }
  0x2b   : > { %2354 = dma.hbm_to_vmem [thread:$0]  (!%p2965_p5), %s651_s30, 256, %s653_s22, [#allocation14], %s2780_s23, %s2780_s23, %s2781_s24  }
  0x2c   : > { %s2783_s4 = smov [#allocation15]   ;;  %s2784_s17 = smov [#allocation16]  }
  0x2d   : > { %s669_s10 = sshll.u32 %s2783_s4, 4  ;;  %s686_s28 = sshll.u32 %s2784_s17, 4  ;;  %s670_s10 = int_to_ptr.vmem [resolvable:$true] %s669_s10  ;;  %s687_s28 = int_to_ptr.vmem [resolvable:$true] %s686_s28 }
  0x2e   : > { %s667_s15 = sshll.u32 %s3387_s12, 4  ;;  %s2189_s22 = sadd.s32 4294967294, %s2777_s2   ;;  %s668_s15 = int_to_ptr.hbm [resolvable:$true] %s667_s15 }
  0x2f   : > { %2357 = dma.hbm_to_vmem [thread:$0]  (!%p2965_p5), %s668_s15, 256, %s670_s10, [#allocation14], %s2780_s23, %s2780_s23, %s2781_s24  }
  0x30   : > { %s684_s3 = sshll.u32 %s3388_s14, 4  ;;  %s57_s30 = sadd.s32 1, %s2773_s6  ;;  %s685_s3 = int_to_ptr.hbm [resolvable:$true] %s684_s3 }
  0x31   : > { %2360 = dma.hbm_to_vmem [thread:$0]  (!%p2965_p5), %s685_s3, 256, %s687_s28, [#allocation17], %s2780_s23, %s2780_s23, %s2781_s24  }
  0x32   : > { %p59_p7 = scmp.ge.s32.totalorder %s57_s30, 2  ;;  %s64_s8 = sadd.s32 1, %s2765_s27 }
  0x33   : > { %p71_p8 = scmp.ne.s32.totalorder %s2765_s27, %s2761_s26  ;;  %p72_p9 = scmp.eq.s32.totalorder %s2777_s2, 0 }
  0x34   : > { %s3424_s30 = smov (%p59_p7, %s57_s30), 0  ;;  %p77_p11 = scmp.ne.s32.totalorder %s2761_s26, %s2757_s5 }
  0x35   : > { %3389 = sst [smem:[#allocation29_spill]] %s3424_s30  ;;  %p2995_p10 = por %p72_p9, %p71_p8 }
  0x36   : > { %s61_s15 = ssub.s32 %s2773_s6, %s3424_s30  ;;  %p591_p12 = scmp.eq.s32.totalorder %s2949_s29, 1 }
  0x37   : > { %p62_p13 = scmp.eq.s32.totalorder %s61_s15, 0  ;;  %p3006_p0 = por %p78_p1, %p77_p11 }
  0x38   : > { %p3010_p2 = por %p591_p12, %p71_p8  ;;  %p597_p4 = scmp.eq.s32.totalorder %s2189_s22, 1 }
  0x39   : > { %s3015_s1 = scalar_select %p62_p13, %s2765_s27, %s64_s8  }
  0x3a   : > { %s3392_s24 = scalar_select %p3010_p2, 1, 0 }
  0x3b   : > { %3394 = sst [smem:[#allocation31_spill]] %s3015_s1  ;;  %p3017_p5 = por %p597_p4, %p77_p11 }
  0x3c   : > { %3393 = sst [smem:[#allocation30_spill]] %s3392_s24  ;;  %p2376_p7 = scmp.lt.s32.totalorder %s2777_s2, 2 }
  0x3d   : > { %s3395_s0 = scalar_select %p3017_p5, 1, 0 }
  0x3e   : > { %s727_s7 = sand.u32 1, %s2765_s27   ;;  %s2197_s3 = sshll.u32 %s2773_s6, 2 }
  0x3f   : > { %3396 = sst [smem:[#allocation32_spill]] %s3395_s0  ;;  %s2196_s4 = sshll.u32 %s727_s7, 2 }
  0x40   : > { %s3397_s15 = sld [smem:[#allocation33_spill]]  ;;  %s731_s30 = scalar_lea.vmem [#allocation7], %s2196_s4 }
  0x41   : > { %s739_s5 = sshll.u32 %s731_s30, 4  ;;  %p2362_p8 = pnand %p2376_p7, %p2995_p10  ;;  %s740_s5 = int_to_ptr.vmem [resolvable:$true] %s739_s5 }
  0x42   : > { %s3398_s1 = sld [smem:[#allocation34_spill]]  ;;  %s746_s0 = sand.u32 1, %s2777_s2  }
  0x43   : > { %s728_s21 = scalar_lea.sflag [#allocation8], %s727_s7  ;;  %s750_s27 = scalar_lea.vmem [#allocation10], %s2196_s4 }
  0x44   : > { %s758_s20 = sshll.u32 %s750_s27, 4  ;;  %s747_s17 = scalar_lea.sflag [#allocation11], %s746_s0  ;;  %s759_s20 = int_to_ptr.vmem [resolvable:$true] %s758_s20 }
  0x46   : > { %s735_s12 = scalar_lea.hbm %s3397_s15, %s2197_s3 }
  0x47   : > { %s737_s14 = sshll.u32 %s735_s12, 4  ;;  %767 = sbr.rel (%p2957_p3) target bundleno = 3697 (0xe71), region = 116  ;;  %s738_s14 = int_to_ptr.hbm [resolvable:$true] %s737_s14 }
  0x48   : > { %s754_s24 = scalar_lea.hbm %s3398_s1, %s2197_s3  ;;  %s3036_s12 = sand.u32 (!%p2957_p3), 1, %s2761_s26  }
  0x49   : > { %2364 = dma.hbm_to_vmem [thread:$0]  (!%p2362_p8), %s738_s14, 64, %s740_s5, %s728_s21  }
  0x4a   : > { %s756_s6 = sshll.u32 %s754_s24, 4  ;;  %s2201_s30 = sshll.u32 (!%p2957_p3), %s3036_s12, 2  ;;  %s757_s6 = int_to_ptr.hbm [resolvable:$true] %s756_s6 }
  0x4b   : > { %2367 = dma.hbm_to_vmem [thread:$0]  (!%p2362_p8), %s757_s6, 64, %s759_s20, %s747_s17  }
  0x4c   : > { %s770_s10 = scalar_lea.sflag [#allocation8], %s3036_s12  ;;  %s773_s1 = scalar_lea.vmem [#allocation7], %s2201_s30 }
  0x4d   : > { %2732 = dma.done.wait (%p3006_p0), %s770_s10, 64  }
  0x4e   : > { %2734 = vsyncadd (%p3006_p0), %s770_s10, 4294967232  ;;  %s779_s14 = sand.u32 1, %s2949_s29   ;;  %s3045_s21 = scalar_lea.vmem [#allocation10], %s2201_s30 }
  0x4f   : > { %s780_s20 = scalar_lea.sflag [#allocation11], %s779_s14 }
  0x50   : > { %2736 = dma.done.wait (%p3006_p0), %s780_s20, 64  }
  0x51   : > { %2738 = vsyncadd (%p3006_p0), %s780_s20, 4294967232 }
  0x52   : > { %2740 = dma.done.wait (%p78_p1), [#allocation11], 256  }
  0x53   : > { %2742 = vsyncadd (%p78_p1), [#allocation11], 4294967040 }
  0x54   : > { %2744 = dma.done.wait (%p78_p1), [#allocation14], 512  }
  0x55   : > { %2746 = vsyncadd (%p78_p1), [#allocation14], 4294966784 }
  0x56   : > { %2748 = dma.done.wait (%p78_p1), [#allocation17], 256  }
  0x57   : > { %2750 = vsyncadd (%p78_p1), [#allocation17], 4294967040  ;;  %s3399_s6 = sld [smem:[#allocation37_spill]]  ;;  %vm900_vm0 = vcmask 261120   ;;  %v879_v4 = vld [vmem:[%s773_s1] sm:$0xf] }
  0x58   : > { %s3401_s3 = sld [smem:[#allocation35_spill]]  ;;  %v3075_v5 = vld [vmem:[%s773_s1] sm:$0xf]  ;;  %s2785_s10 = smov 112   ;;  %vm953_vm1 = vcmask 60416   ;;  %vm1099_vm2 = vcmask 1043456  }
  0x59   : > { %s3402_s22 = sld [smem:[#allocation38_spill]]  ;;  %s2786_s1 = smov 104   ;;  %vm1095_vm3 = vcmask 64512   ;;  %vm963_vm4 = vcmask 257024  }
  0x5a   : > { %s3403_s30 = sld [smem:[#allocation36_spill]]  ;;  %s2787_s14 = smov 120  }
  0x5b   : > { %s2788_s20 = smov 96   ;;  %s2790_s5 = smov 16  }
  0x5c   : > { %s2791_s27 = smov 24   ;;  %s3404_s24 = sld [smem:[#allocation39_spill]] }
  0x5d   : > { %s3400_s25 = smov %s3399_s6  ;;  %v2309_v0 = vld [vmem:[%s3399_s6 + $0x8] sm:$0xff]  ;;  %s3405_s29 = sld [smem:[#allocation40_spill]] }
  0x5e   : > { %v2308_v1 = vld [vmem:[%s3400_s25] sm:$0xff]  ;;  %v2313_v2 = vld [vmem:[%s3401_s3 + $0x8] sm:$0xff]  ;;  %910 = vmatpush.bf16.msra.mxu0 %v2309_v0  ;;  %s3406_s4 = sld [smem:[#allocation47_spill]] }
  0x5f   : > { %v2312_v3 = vld [vmem:[%s3401_s3] sm:$0xff]  ;;  %1085 = vmatpush.bf16.msra.mxu2 %v2313_v2  ;;  %s3407_s15 = sld [smem:[#allocation48_spill]] }
  0x60   : > { %v2445_v6 = vld [vmem:[%s3402_s22] ss:$0 sm:$0xff]  ;;  %s3408_s0 = sld [smem:[#allocation45_spill]] }
  0x61   : > { %v2446_v9 = vld [vmem:[%s3403_s30] ss:$0 sm:$0xff]  ;;  %s3414_s6 = sld [smem:[#allocation50_spill]] }
  0x62   : > { %911 = vmatpush.bf16.msra.mxu0 %v2308_v1 }
  0x63   : > { %1086 = vmatpush.bf16.msra.mxu2 %v2312_v3 }
  0x65   : > { %2216 = vmatmul.msk.bf16.vlgmr.msra.gmra.mxu0 %vm900_vm0, %v879_v4 }
  0x66   : > { %2234 = vmatmul.msk.bf16.vlgmr.msra.gmra.mxu2 %vm900_vm0, %v3075_v5 }
  0xe2   : > { %v913_v7 = vpop.f32.mrf.mxu0 }
  0xe3   : > { %v3083_v8 = vadd.f32 %v2445_v6, %v913_v7 }
  0xe5   : > { %917 = vxpose.xlu0.b32.start.end [1/1] (short) (narrow) %v3083_v8, 32  ;;  %v958_v49 = vpack.c.bf16 %v3083_v8, %v3083_v8 }
  0xe9   : > { %v1088_v10 = vpop.f32.mrf.mxu2 }
  0xea   : > { %v915_v11 = vpop.f32.mrf.mxu0  ;;  %v1089_v12 = vadd.f32 %v2446_v9, %v1088_v10 }
  0xec   : > { %v1092_v13 = vmul.f32 0.35355338, %v1089_v12 }
  0xee   : > { %v1093_v14 = vpack.c.bf16 %v1092_v13, %v1092_v13 }
  0xf0   : > { %v1167_v15 = vunpack.c.l.b16 %v1093_v14 }
  0xf1   : > { %v1090_v16 = vpop.f32.mrf.mxu2 }
  0xf2   : > { %v1168_v17 = vpack.c.b16 %v1167_v15, %v1167_v15 }
  0xf4   : > { %1249 = vrot.lane.b32.xlu1 %v1168_v17, %s2785_s10 }
  0xfc   : > { %1329 = vrot.lane.b32.xlu1 %v1168_v17, %s2786_s1 }
 0x166   : > { %v1250_v32 = vpop.permute.xlu1 %1249 }
 0x16b   : > { %1169 = vrot.lane.b32.xlu0 %v1168_v17, %s2787_s14 }
 0x16e   : > { %v1330_v36 = vpop.permute.xlu1 %1329 }
 0x189   : > { %v933_v18 = vpop.trf.xlu0 }
 0x18a   : > { %v949_v19 = vpack.c.bf16 %v933_v18, %v933_v18 }
 0x18c   : > { %954 = vst.msk [vmem:[#allocation2] sm:$0xf] %vm953_vm1, %v949_v19 }
 0x191   : > { %v934_v20 = vpop.trf.xlu0 }
 0x192   : > { %v950_v21 = vpack.c.bf16 %v934_v20, %v934_v20 }
 0x193   : > { %v1094_v22 = vld [vmem:[#allocation2] sm:$0xf] }
 0x194   : > { %955 = vst.msk [vmem:[#allocation2 + $0x4] sm:$0xf] %vm953_vm1, %v950_v21  ;;  %v1101_v23 = vsel %vm1099_vm2, %v1094_v22, 0 }
 0x195   : > { %1110 = vmatpush.bf16.msra.mxu3 %v1101_v23 }
 0x198   : > { %2235 = vmatmul.msk.bf16.vlgmr.msra.gmra.mxu3 %vm1095_vm3, %v1093_v14 }
 0x199   : > { %v935_v24 = vpop.trf.xlu0 }
 0x19a   : > { %v951_v25 = vpack.c.bf16 %v935_v24, %v935_v24 }
 0x19b   : > { %v1165_v26 = vld [vmem:[#allocation2 + $0x4] sm:$0xf] }
 0x19c   : > { %956 = vst.msk [vmem:[#allocation2 + $0x8] sm:$0xf] %vm953_vm1, %v951_v25  ;;  %v1175_v27 = vsel %vm1099_vm2, %v1165_v26, 0  ;;  %v2311_v26 = vld [vmem:[#allocation13 + $0x8] sm:$0xff] }
 0x19d   : > { %1184 = vmatpush.bf16.msrb.mxu0 %v1175_v27  ;;  %995 = vmatpush.bf16.msra.mxu1 %v2311_v26 }
 0x1a1   : > { %v936_v28 = vpop.trf.xlu0 }
 0x1a2   : > { %v952_v29 = vpack.c.bf16 %v936_v28, %v936_v28 }
 0x1a3   : > { %v1248_v30 = vld [vmem:[#allocation2 + $0x8] sm:$0xf] }
 0x1a4   : > { %v1255_v31 = vsel %vm1099_vm2, %v1248_v30, 0  ;;  %957 = vst.msk [vmem:[#allocation2 + $0xc] sm:$0xf] %vm953_vm1, %v952_v29 }
 0x1a5   : > { %1264 = vmatpush.bf16.msrb.mxu2 %v1255_v31 }
 0x1a8   : > { %2239 = vmatmul.msk.bf16.vlgmr.msrb.gmra.mxu2 %vm1095_vm3, %v1250_v32 }
 0x1ab   : > { %v1328_v33 = vld [vmem:[#allocation2 + $0xc] sm:$0xf] }
 0x1ac   : > { %v1335_v34 = vsel %vm1099_vm2, %v1328_v33, 0  ;;  %v2310_v33 = vld [vmem:[#allocation13] sm:$0xff] }
 0x1ad   : > { %1344 = vmatpush.bf16.msra.mxu0 %v1335_v34  ;;  %996 = vmatpush.bf16.msra.mxu1 %v2310_v33  ;;  %v2314_v33 = vld [vmem:[%s3404_s24] sm:$0xff] }
 0x1dd   : > { %v1170_v35 = vpop.permute.xlu0 %1169 }
 0x1de   : > { %2237 = vmatmul.msk.bf16.vlgmr.msrb.gmra.mxu0 %vm1095_vm3, %v1170_v35 }
 0x1ee   : > { %2241 = vmatmul.msk.bf16.vlgmr.msra.gmra.mxu0 %vm1095_vm3, %v1330_v36 }
 0x21b   : > { %v1112_v37 = vpop.f32.mrf.mxu3 }
 0x21c   : > { %v1116_v38 = vsel %vm1095_vm3, %v1112_v37, -inf }
 0x21d   : > { %1117 = vmax.xlane.f32.xlu2 %v1116_v38  ;;  %v965_v38 = vld [vmem:[%s3045_s21] sm:$0xf]  ;;  %s2789_s21 = smov 8  }
 0x21e   : > { %2225 = vmatmul.msk.bf16.vlgmr.msra.gmra.mxu1 %vm900_vm0, %v965_v38  ;;  %v1054_v38 = vunpack.c.l.bf16 %v3075_v5 }
 0x223   : > { %v1114_v39 = vpop.f32.mrf.mxu3 }
 0x22b   : > { %v1266_v40 = vpop.f32.mrf.mxu2 }
 0x22c   : > { %v1270_v41 = vsel %vm1095_vm3, %v1266_v40, -inf }
 0x22d   : > { %1271 = vmax.xlane.f32.xlu1 %v1270_v41 }
 0x233   : > { %v1268_v42 = vpop.f32.mrf.mxu2 }
 0x25b   : > { %v1186_v43 = vpop.f32.mrf.mxu0 }
 0x25c   : > { %v1190_v44 = vsel %vm1095_vm3, %v1186_v43, -inf }
 0x25d   : > { %1191 = vmax.xlane.f32.xlu2 %v1190_v44 }
 0x263   : > { %v1188_v45 = vpop.f32.mrf.mxu0 }
 0x26b   : > { %v1346_v46 = vpop.f32.mrf.mxu0 }
 0x26c   : > { %v1350_v47 = vsel %vm1095_vm3, %v1346_v46, -inf }
 0x26d   : > { %1351 = vmax.xlane.f32.xlu2 %v1350_v47 }
 0x273   : > { %v1348_v48 = vpop.f32.mrf.mxu0 }
 0x285   : > { %960 = vrot.lane.b32.xlu2 %v958_v49, %s2788_s20 }
 0x290   : > { %v1118_v50 = vpop.xlane.xlu2 %1117 }
 0x291   : > { %v1119_v51 = vsub.f32 %v1112_v37, %v1118_v50 }
 0x293   : > { %v1120_v52 = vmul.f32 1.442695, %v1119_v51 }
 0x295   : > { %2459 = vpow2.f32 %v1120_v52 }
 0x29b   : > { %v2460_v53 = vpop.eup %2459 }
 0x29c   : > { %v1122_v54 = vsel %vm1095_vm3, %v2460_v53, 0.0 }
 0x2a0   : > { %v1272_v4 = vpop.xlane.xlu1 %1271 }
 0x2a1   : > { %v1273_v6 = vsub.f32 %v1266_v40, %v1272_v4 }
 0x2a3   : > { %v1274_v7 = vmul.f32 1.442695, %v1273_v6 }
 0x2ae   : > { %1123 = vadd.xlane.f32.xlu2 %v1122_v54 }
 0x2d0   : > { %v1192_v55 = vpop.xlane.xlu2 %1191 }
 0x2d1   : > { %v1193_v2 = vsub.f32 %v1186_v43, %v1192_v55 }
 0x2d3   : > { %v1194_v3 = vmul.f32 1.442695, %v1193_v2 }
 0x2d5   : > { %2461 = vpow2.f32 %v1194_v3 }
 0x2d6   : > { %2463 = vpow2.f32 %v1274_v7 }
 0x2db   : > { %v3116_v8 = vpop.eup %2461 }
 0x2dc   : > { %v1196_v10 = vsel %vm1095_vm3, %v3116_v8, 0.0  ;;  %v3120_v13 = vpop.eup %2463 }
 0x2dd   : > { %v1276_v14 = vsel %vm1095_vm3, %v3120_v13, 0.0 }
 0x2e0   : > { %v1352_v56 = vpop.xlane.xlu2 %1351 }
 0x2e1   : > { %v1353_v9 = vsub.f32 %v1346_v46, %v1352_v56 }
 0x2e3   : > { %v1354_v11 = vmul.f32 1.442695, %v1353_v9 }
 0x2e8   : > { %v961_v57 = vpop.permute.xlu2 %960 }
 0x2e9   : > { %964 = vst.msk [vmem:[#allocation3] sm:$0xf] %vm963_vm4, %v961_v57 }
 0x2f0   : > { %v1142_v58 = vld [vmem:[#allocation3] sm:$0xf] }
 0x2f1   : > { %v1296_v59 = vld [vmem:[#allocation3] sm:$0xf]  ;;  %v1147_v61 = vsel %vm1099_vm2, %v1142_v58, 0 }
 0x2f2   : > { %v1216_v60 = vld [vmem:[#allocation3] sm:$0xf]  ;;  %v1298_v62 = vunpack.c.l.b16 %v1296_v59  ;;  %1156 = vmatpush.bf16.msrb.mxu3 %v1147_v61 }
 0x2f3   : > { %v1218_v63 = vunpack.c.l.b16 %v1216_v60  ;;  %v1376_v30 = vld [vmem:[#allocation3] sm:$0xf] }
 0x2f4   : > { %v1299_v0 = vpack.c.b16 %v1298_v62, %v1298_v62  ;;  %v1378_v31 = vunpack.c.l.b16 %v1376_v30 }
 0x2f5   : > { %v1219_v1 = vpack.c.b16 %v1218_v63, %v1218_v63 }
 0x2f6   : > { %1300 = vrot.lane.b32.xlu2 %v1299_v0, %s2785_s10  ;;  %v1379_v32 = vpack.c.b16 %v1378_v31, %v1378_v31 }
 0x2f7   : > { %1220 = vrot.lane.b32.xlu1 %v1219_v1, %s2787_s14 }
 0x321   : > { %1197 = vadd.xlane.f32.xlu1 %v1196_v10  ;;  %v1124_v12 = vpop.xlane.xlu2 %1123 }
 0x322   : > { %2465 = vrcp.f32 %v1124_v12  ;;  %v1136_v19 = vand.u32 2147483648, %v1124_v12  ;;  %v1134_v21 = vand.u32 2147483647, %v1124_v12  ;;  %vm1130_vm6 = vweird.f32 %v1124_v12 }
 0x323   : > { %2467 = vpow2.f32 %v1354_v11 }
 0x324   : > { %v1137_v24 = vor.u32 1.1754944e-38, %v1136_v19  ;;  %vm1135_vm8 = vcmp.eq.f32.partialorder %v1134_v21, 8.507059e+37  ;;  %v3142_v21 = vpop.f32.mrf.mxu1 }
 0x328   : > { %v2466_v15 = vpop.eup %2465 }
 0x329   : > { %1277 = vadd.xlane.f32.xlu1 %v1276_v14  ;;  %v1126_v16 = vmul.f32 %v2466_v15, %v1124_v12  ;;  %v3124_v17 = vpop.eup %2467  ;;  %vm1131_vm5 = vweird.f32 %v2466_v15 }
 0x32a   : > { %v1356_v22 = vsel %vm1095_vm3, %v3124_v17, 0.0  ;;  %vm1132_vm7 = vmor %vm1130_vm6, %vm1131_vm5 }
 0x32b   : > { %v1127_v18 = vsub.f32 1.0, %v1126_v16 }
 0x32d   : > { %v1128_v20 = vmul.f32 %v2466_v15, %v1127_v18 }
 0x32f   : > { %v1129_v23 = vadd.f32 %v2466_v15, %v1128_v20 }
 0x331   : > { %1357 = vadd.xlane.f32.xlu1 %v1356_v22  ;;  %v1133_v25 = vsel %vm1132_vm7, %v2466_v15, %v1129_v23  ;;  %v1000_v22 = vpop.f32.mrf.mxu1 }
 0x332   : > { %v1138_v27 = vsel %vm1135_vm8, %v1137_v24, %v1133_v25 }
 0x333   : > { %v1140_v28 = vmul.f32 %v2460_v53, %v1138_v27 }
 0x335   : > { %v1141_v29 = vpack.c.bf16 %v1140_v28, %v1140_v28 }
 0x337   : > { %2236 = vmatmul.msk.bf16.vlgmr.msrb.gmra.mxu3 %vm1095_vm3, %v1141_v29 }
 0x34a   : > { %1380 = vrot.lane.b32.xlu1 %v1379_v32, %s2786_s1  ;;  %v2315_v32 = vld [vmem:[%s3404_s24 + $0x8] sm:$0xff] }
 0x34b   : > { %1438 = vmatpush.bf16.msra.mxu2 %v2315_v32 }
 0x34f   : > { %1439 = vmatpush.bf16.msra.mxu2 %v2314_v33 }
 0x350   : > { %v1301_v34 = vpop.permute.xlu2 %1300 }
 0x351   : > { %v1306_v35 = vsel %vm1099_vm2, %v1301_v34, 0 }
 0x352   : > { %1315 = vmatpush.bf16.msra.mxu3 %v1306_v35 }
 0x369   : > { %v1221_v36 = vpop.permute.xlu1 %1220 }
 0x36a   : > { %v1226_v37 = vsel %vm1099_vm2, %v1221_v36, 0 }
 0x36b   : > { %1235 = vmatpush.bf16.msrb.mxu1 %v1226_v37  ;;  %v2448_v37 = vld [vmem:[%s3405_s29] ss:$0 sm:$0xff] }
 0x394   : > { %v1198_v39 = vpop.xlane.xlu1 %1197 }
 0x395   : > { %2469 = vrcp.f32 %v1198_v39  ;;  %v1210_v45 = vand.u32 2147483648, %v1198_v39  ;;  %v1208_v46 = vand.u32 2147483647, %v1198_v39  ;;  %vm1204_vm10 = vweird.f32 %v1198_v39 }
 0x397   : > { %v1211_v49 = vor.u32 1.1754944e-38, %v1210_v45  ;;  %vm1209_vm12 = vcmp.eq.f32.partialorder %v1208_v46, 8.507059e+37 }
 0x39b   : > { %v2470_v40 = vpop.eup %2469 }
 0x39c   : > { %v1200_v41 = vmul.f32 %v2470_v40, %v1198_v39  ;;  %v1278_v42 = vpop.xlane.xlu1 %1277  ;;  %vm1205_vm9 = vweird.f32 %v2470_v40 }
 0x39d   : > { %2471 = vrcp.f32 %v1278_v42  ;;  %vm1206_vm11 = vmor %vm1204_vm10, %vm1205_vm9  ;;  %v1290_v55 = vand.u32 2147483648, %v1278_v42  ;;  %v1288_v58 = vand.u32 2147483647, %v1278_v42  ;;  %vm1284_vm14 = vweird.f32 %v1278_v42 }
 0x39e   : > { %v1201_v43 = vsub.f32 1.0, %v1200_v41  ;;  %vm1246_vm10 = vcmask 126016  }
 0x39f   : > { %v1291_v62 = vor.u32 1.1754944e-38, %v1290_v55  ;;  %vm1289_vm5 = vcmp.eq.f32.partialorder %v1288_v58, 8.507059e+37  ;;  %v2317_v55 = vld [vmem:[#allocation12 + $0x8] sm:$0xff] }
 0x3a0   : > { %v1202_v44 = vmul.f32 %v2470_v40, %v1201_v43  ;;  %1515 = vmatpush.bf16.msrb.mxu3 %v2317_v55 }
 0x3a2   : > { %v1203_v47 = vadd.f32 %v2470_v40, %v1202_v44  ;;  %v2792_v44 = vmov 32.0  }
 0x3a3   : > { %v2472_v48 = vpop.eup %2471 }
 0x3a4   : > { %v1280_v50 = vmul.f32 %v2472_v48, %v1278_v42  ;;  %v1358_v51 = vpop.xlane.xlu1 %1357  ;;  %v1207_v52 = vsel %vm1206_vm11, %v2470_v40, %v1203_v47  ;;  %vm1285_vm13 = vweird.f32 %v2472_v48  ;;  %vm1326_vm11 = vcmask 191616  }
 0x3a5   : > { %2473 = vrcp.f32 %v1358_v51  ;;  %v1212_v54 = vsel %vm1209_vm12, %v1211_v49, %v1207_v52  ;;  %vm1286_vm15 = vmor %vm1284_vm14, %vm1285_vm13  ;;  %vm1364_vm7 = vweird.f32 %v1358_v51  ;;  %v1368_v9 = vand.u32 2147483647, %v1358_v51 }
 0x3a6   : > { %v1281_v53 = vsub.f32 1.0, %v1280_v50  ;;  %v1214_v56 = vmul.f32 %v3116_v8, %v1212_v54  ;;  %v1370_v8 = vand.u32 2147483648, %v1358_v51  ;;  %vm1406_vm12 = vcmask 257216  }
 0x3a7   : > { %vm1369_vm9 = vcmp.eq.f32.partialorder %v1368_v9, 8.507059e+37  ;;  %2475 = vrcp.f32 %v2792_v44 }
 0x3a8   : > { %v1282_v57 = vmul.f32 %v2472_v48, %v1281_v53  ;;  %v1215_v59 = vpack.c.bf16 %v1214_v56, %v1214_v56  ;;  %v1371_v11 = vor.u32 1.1754944e-38, %v1370_v8  ;;  %v2316_v56 = vld [vmem:[#allocation12] sm:$0xff] }
 0x3a9   : > { %1516 = vmatpush.bf16.msrb.mxu3 %v2316_v56 }
 0x3aa   : > { %v1283_v60 = vadd.f32 %v2472_v48, %v1282_v57  ;;  %2238 = vmatmul.msk.bf16.vlgmr.msrb.gmra.mxu1 %vm1095_vm3, %v1215_v59 }
 0x3ab   : > { %v2474_v61 = vpop.eup %2473 }
 0x3ac   : > { %v1287_v63 = vsel %vm1286_vm15, %v2472_v48, %v1283_v60  ;;  %v1360_v0 = vmul.f32 %v2474_v61, %v1358_v51  ;;  %vm1365_vm6 = vweird.f32 %v2474_v61 }
 0x3ad   : > { %v1292_v1 = vsel %vm1289_vm5, %v1291_v62, %v1287_v63  ;;  %vm1366_vm8 = vmor %vm1364_vm7, %vm1365_vm6  ;;  %v2476_v45 = vpop.eup %2475 }
 0x3ae   : > { %v1294_v2 = vmul.f32 %v3120_v13, %v1292_v1  ;;  %v1361_v3 = vsub.f32 1.0, %v1360_v0  ;;  %v1450_v46 = vmul.f32 32.0, %v2476_v45  ;;  %vm1454_vm13 = vweird.f32 %v2476_v45 }
 0x3b0   : > { %v1362_v4 = vmul.f32 %v2474_v61, %v1361_v3  ;;  %v1295_v6 = vpack.c.bf16 %v1294_v2, %v1294_v2  ;;  %v1451_v47 = vsub.f32 1.0, %v1450_v46  ;;  %v2449_v2 = vld [vmem:[%s3342_s18] ss:$0 sm:$0xff] }
 0x3b2   : > { %v1363_v7 = vadd.f32 %v2474_v61, %v1362_v4  ;;  %2240 = vmatmul.msk.bf16.vlgmr.msra.gmra.mxu3 %vm1095_vm3, %v1295_v6  ;;  %v1452_v48 = vmul.f32 %v2476_v45, %v1451_v47  ;;  %v2450_v4 = vld [vmem:[%s3343_s19] ss:$0 sm:$0xff] }
 0x3b4   : > { %v1367_v10 = vsel %vm1366_vm8, %v2474_v61, %v1363_v7  ;;  %v1453_v49 = vadd.f32 %v2476_v45, %v1452_v48 }
 0x3b5   : > { %v1372_v12 = vsel %vm1369_vm9, %v1371_v11, %v1367_v10  ;;  %v2451_v10 = vld [vmem:[%s3333_s9] ss:$0 sm:$0xff] }
 0x3b6   : > { %v1374_v14 = vmul.f32 %v3124_v17, %v1372_v12  ;;  %v3162_v50 = vsel %vm1454_vm13, %v2476_v45, %v1453_v49 }
 0x3b8   : > { %v1375_v19 = vpack.c.bf16 %v1374_v14, %v1374_v14 }
 0x3ba   : > { %v1158_v16 = vpop.f32.mrf.mxu3 }
 0x3bb   : > { %v1162_v18 = vpack.c.bf16 %v1158_v16, %v1158_v16 }
 0x3bc   : > { %v1381_v15 = vpop.permute.xlu1 %1380 }
 0x3bd   : > { %v1386_v13 = vsel %vm1099_vm2, %v1381_v15, 0  ;;  %1164 = vst.msk [vmem:[#allocation6] sm:$0xf] %vm953_vm1, %v1162_v18 }
 0x3be   : > { %1395 = vmatpush.bf16.msra.mxu1 %v1386_v13 }
 0x3c1   : > { %2242 = vmatmul.msk.bf16.vlgmr.msra.gmra.mxu1 %vm1095_vm3, %v1375_v19  ;;  %v2447_v19 = vld [vmem:[%s3335_s11] ss:$0 sm:$0xff] }
 0x3c2   : > { %v1160_v20 = vpop.f32.mrf.mxu3 }
 0x3c3   : > { %v999_v20 = vadd.f32 %v2447_v19, %v3142_v21 }
 0x3c5   : > { %v1042_v48 = vpack.c.bf16 %v999_v20, %v999_v20 }
 0x427   : > { %v1237_v23 = vpop.f32.mrf.mxu1 }
 0x428   : > { %v1241_v24 = vpack.c.bf16 %v1237_v23, %v1237_v23 }
 0x42a   : > { %1243 = vrot.lane.b32.xlu2 %v1241_v24, %s2789_s21 }
 0x42f   : > { %v1239_v17 = vpop.f32.mrf.mxu1 }
 0x435   : > { %v1317_v25 = vpop.f32.mrf.mxu3 }
 0x436   : > { %v1321_v26 = vpack.c.bf16 %v1317_v25, %v1317_v25 }
 0x438   : > { %1323 = vrot.lane.b32.xlu1 %v1321_v26, %s2790_s5 }
 0x43d   : > { %v1319_v27 = vpop.f32.mrf.mxu3 }
 0x43e   : > { %v1397_v28 = vpop.f32.mrf.mxu1 }
 0x43f   : > { %v1401_v29 = vpack.c.bf16 %v1397_v28, %v1397_v28 }
 0x441   : > { %1403 = vrot.lane.b32.xlu2 %v1401_v29, %s2791_s27 }
 0x446   : > { %v1399_v30 = vpop.f32.mrf.mxu1 }
 0x484   : > { %v1244_v31 = vpop.permute.xlu2 %1243 }
 0x485   : > { %1247 = vst.msk [vmem:[#allocation6] sm:$0xf] %vm1246_vm10, %v1244_v31 }
 0x49b   : > { %v1404_v35 = vpop.permute.xlu2 %1403 }
 0x4aa   : > { %v1324_v34 = vpop.permute.xlu1 %1323 }
 0x4ab   : > { %1327 = vst.msk [vmem:[#allocation6] sm:$0xf] %vm1326_vm11, %v1324_v34 }
 0x4ac   : > { %1407 = vst.msk [vmem:[#allocation6] sm:$0xf] %vm1406_vm12, %v1404_v35 }
 0x4b3   : > { %v1408_v36 = vld [vmem:[#allocation6] sm:$0xf] }
 0x4b4   : > { %2251 = vmatmul.msk.bf16.vlgmr.msra.gmra.mxu2 %vm900_vm0, %v1408_v36 }
 0x537   : > { %v1441_v39 = vpop.f32.mrf.mxu2 }
 0x538   : > { %v1442_v40 = vadd.f32 %v2448_v37, %v1441_v39 }
 0x53a   : > { %v1445_v41 = vadd.f32 %v1442_v40, %v1054_v38 }
 0x53c   : > { %v1446_v42 = vsel %vm900_vm0, %v1445_v41, 0.0 }
 0x53d   : > { %1447 = vadd.xlane.f32.xlu1 %v1446_v42 }
 0x53f   : > { %v1443_v43 = vpop.f32.mrf.mxu2 }
 0x5b0   : > { %v1448_v51 = vpop.xlane.xlu1 %1447 }
 0x5b1   : > { %v1456_v5 = vmul.f32 %v3162_v50, %v1448_v51 }
 0x5b3   : > { %v1457_v52 = vsub.f32 %v1445_v41, %v1456_v5 }
 0x5b5   : > { %v1458_v53 = vmul.f32 %v1457_v52, %v1457_v52 }
 0x5b7   : > { %v1459_v54 = vsel %vm900_vm0, %v1458_v53, 0.0 }
 0x5b8   : > { %1460 = vadd.xlane.f32.xlu2 %v1459_v54 }
 0x62b   : > { %v1461_v57 = vpop.xlane.xlu2 %1460 }
 0x62c   : > { %v1462_v58 = vmul.f32 %v1461_v57, %v3162_v50 }
 0x62e   : > { %v1463_v59 = vadd.f32 1e-05, %v1462_v58 }
 0x630   : > { %2477 = vrsqrt.f32 %v1463_v59  ;;  %vm1470_vm15 = vweird.f32 %v1463_v59 }
 0x636   : > { %v2478_v60 = vpop.eup %2477 }
 0x637   : > { %v1465_v61 = vmul.f32 %v2478_v60, %v1463_v59  ;;  %vm1471_vm14 = vweird.f32 %v2478_v60 }
 0x638   : > { %vm1472_vm5 = vmor %vm1470_vm15, %vm1471_vm14 }
 0x639   : > { %v1466_v62 = vmul.f32 %v2478_v60, %v1465_v61 }
 0x63b   : > { %v1467_v63 = vmul.f32 0.5, %v1466_v62 }
 0x63d   : > { %v1468_v0 = vsub.f32 1.5, %v1467_v63 }
 0x63f   : > { %v1469_v1 = vmul.f32 %v2478_v60, %v1468_v0 }
 0x641   : > { %v1473_v3 = vsel %vm1472_vm5, %v2478_v60, %v1469_v1 }
 0x642   : > { %v1474_v6 = vmul.f32 %v1473_v3, %v1457_v52 }
 0x644   : > { %v1479_v7 = vmul.f32 %v2449_v2, %v1474_v6 }
 0x646   : > { %v3173_v8 = vadd.f32 %v2450_v4, %v1479_v7 }
 0x648   : > { %v1485_v9 = vpack.c.bf16 %v3173_v8, %v3173_v8 }
 0x64a   : > { %2260 = vmatmul.msk.bf16.vlgmr.msrb.gmra.mxu3 %vm900_vm0, %v1485_v9 }
 0x6cd   : > { %v1518_v11 = vpop.f32.mrf.mxu3 }
 0x6ce   : > { %v1519_v12 = vadd.f32 %v2451_v10, %v1518_v11 }
 0x6d0   : > { %v1522_v14 = vmul.f32 0.35355338, %v1519_v12 }
 0x6d2   : > { %v1523_v15 = vpack.c.bf16 %v1522_v14, %v1522_v14 }
 0x6d4   : > { %v1594_v16 = vunpack.c.l.b16 %v1523_v15 }
 0x6d5   : > { %v1520_v13 = vpop.f32.mrf.mxu3 }
 0x6d6   : > { %v1595_v18 = vpack.c.b16 %v1594_v16, %v1594_v16 }
 0x6d8   : > { %1675 = vrot.lane.b32.xlu2 %v1595_v18, %s2785_s10  ;;  %1754 = vrot.lane.b32.xlu1 %v1595_v18, %s2786_s1 }
 0x6d9   : > { %1596 = vrot.lane.b32.xlu0 %v1595_v18, %s2787_s14 }
 0x6fb   : > { %1002 = vxpose.xlu0.b32.start.end [1/1] (short) (narrow) %v999_v20, 32 }
 0x732   : > { %v1676_v35 = vpop.permute.xlu2 %1675 }
 0x74a   : > { %v1755_v38 = vpop.permute.xlu1 %1754 }
 0x74b   : > { %v1597_v22 = vpop.permute.xlu0 %1596 }
 0x79f   : > { %v1018_v23 = vpop.trf.xlu0 }
 0x7a0   : > { %v1034_v24 = vpack.c.bf16 %v1018_v23, %v1018_v23 }
 0x7a2   : > { %1038 = vst.msk [vmem:[#allocation4] sm:$0xf] %vm953_vm1, %v1034_v24 }
 0x7a7   : > { %v1019_v17 = vpop.trf.xlu0 }
 0x7a8   : > { %v1035_v25 = vpack.c.bf16 %v1019_v17, %v1019_v17 }
 0x7a9   : > { %v1524_v26 = vld [vmem:[#allocation4] sm:$0xf] }
 0x7aa   : > { %1039 = vst.msk [vmem:[#allocation4 + $0x4] sm:$0xf] %vm953_vm1, %v1035_v25  ;;  %v1529_v27 = vsel %vm1099_vm2, %v1524_v26, 0 }
 0x7ab   : > { %1538 = vmatpush.bf16.msrb.mxu0 %v1529_v27 }
 0x7ae   : > { %2261 = vmatmul.msk.bf16.vlgmr.msrb.gmra.mxu0 %vm1095_vm3, %v1523_v15 }
 0x7af   : > { %v1020_v28 = vpop.trf.xlu0 }
 0x7b0   : > { %v1036_v29 = vpack.c.bf16 %v1020_v28, %v1020_v28 }
 0x7b1   : > { %v1592_v30 = vld [vmem:[#allocation4 + $0x4] sm:$0xf] }
 0x7b2   : > { %1040 = vst.msk [vmem:[#allocation4 + $0x8] sm:$0xf] %vm953_vm1, %v1036_v29  ;;  %v1602_v21 = vsel %vm1099_vm2, %v1592_v30, 0 }
 0x7b3   : > { %1611 = vmatpush.bf16.msrb.mxu2 %v1602_v21 }
 0x7b6   : > { %2263 = vmatmul.msk.bf16.vlgmr.msrb.gmra.mxu2 %vm1095_vm3, %v1597_v22 }
 0x7b7   : > { %v1021_v31 = vpop.trf.xlu0 }
 0x7b8   : > { %v1037_v32 = vpack.c.bf16 %v1021_v31, %v1021_v31 }
 0x7b9   : > { %v1674_v33 = vld [vmem:[#allocation4 + $0x8] sm:$0xf] }
 0x7ba   : > { %1041 = vst.msk [vmem:[#allocation4 + $0xc] sm:$0xf] %vm953_vm1, %v1037_v32  ;;  %v1681_v34 = vsel %vm1099_vm2, %v1674_v33, 0 }
 0x7bb   : > { %1690 = vmatpush.bf16.msra.mxu0 %v1681_v34 }
 0x7be   : > { %2265 = vmatmul.msk.bf16.vlgmr.msra.gmra.mxu0 %vm1095_vm3, %v1676_v35 }
 0x7c1   : > { %v1753_v36 = vld [vmem:[#allocation4 + $0xc] sm:$0xf] }
 0x7c2   : > { %v1760_v37 = vsel %vm1099_vm2, %v1753_v36, 0 }
 0x7c3   : > { %1769 = vmatpush.bf16.msra.mxu2 %v1760_v37 }
 0x7c6   : > { %2267 = vmatmul.msk.bf16.vlgmr.msra.gmra.mxu2 %vm1095_vm3, %v1755_v38 }
 0x82b   : > { %v1540_v39 = vpop.f32.mrf.mxu0 }
 0x82c   : > { %v1544_v40 = vsel %vm1095_vm3, %v1540_v39, -inf }
 0x82d   : > { %1545 = vmax.xlane.f32.xlu1 %v1544_v40 }
 0x833   : > { %v1542_v41 = vpop.f32.mrf.mxu0 }
 0x839   : > { %v1613_v42 = vpop.f32.mrf.mxu2 }
 0x83a   : > { %v1617_v43 = vsel %vm1095_vm3, %v1613_v42, -inf }
 0x83b   : > { %1618 = vmax.xlane.f32.xlu0 %v1617_v43  ;;  %v1692_v44 = vpop.f32.mrf.mxu0 }
 0x83c   : > { %v1696_v45 = vsel %vm1095_vm3, %v1692_v44, -inf }
 0x83d   : > { %1697 = vmax.xlane.f32.xlu2 %v1696_v45 }
 0x841   : > { %v1615_v46 = vpop.f32.mrf.mxu2 }
 0x843   : > { %v1694_v47 = vpop.f32.mrf.mxu0 }
 0x846   : > { %1044 = vrot.lane.b32.xlu1 %v1042_v48, %s2788_s20  ;;  %s3410_s20 = sld [smem:[#allocation27_spill]] }
 0x849   : > { %v1771_v49 = vpop.f32.mrf.mxu2 }
 0x84a   : > { %v1775_v59 = vsel %vm1095_vm3, %v1771_v49, -inf }
 0x851   : > { %v1773_v51 = vpop.f32.mrf.mxu2 }
 0x8a0   : > { %v1546_v5 = vpop.xlane.xlu1 %1545 }
 0x8a1   : > { %v1547_v52 = vsub.f32 %v1540_v39, %v1546_v5 }
 0x8a3   : > { %v1548_v53 = vmul.f32 1.442695, %v1547_v52 }
 0x8a5   : > { %2479 = vpow2.f32 %v1548_v53 }
 0x8ab   : > { %v2480_v54 = vpop.eup %2479 }
 0x8ac   : > { %v1550_v55 = vsel %vm1095_vm3, %v2480_v54, 0.0 }
 0x8ad   : > { %1551 = vadd.xlane.f32.xlu2 %v1550_v55 }
 0x8ae   : > { %v1619_v56 = vpop.xlane.xlu0 %1618 }
 0x8af   : > { %v1620_v57 = vsub.f32 %v1613_v42, %v1619_v56 }
 0x8b0   : > { %v1698_v9 = vpop.xlane.xlu2 %1697 }
 0x8b1   : > { %v1621_v58 = vmul.f32 1.442695, %v1620_v57  ;;  %v1699_v10 = vsub.f32 %v1692_v44, %v1698_v9 }
 0x8b3   : > { %2481 = vpow2.f32 %v1621_v58  ;;  %v1700_v11 = vmul.f32 1.442695, %v1699_v10 }
 0x8b5   : > { %1776 = vmax.xlane.f32.xlu2 %v1775_v59  ;;  %2483 = vpow2.f32 %v1700_v11 }
 0x8b8   : > { %v1045_v60 = vpop.permute.xlu1 %1044 }
 0x8b9   : > { %v3206_v61 = vpop.eup %2481  ;;  %1047 = vst.msk [vmem:[#allocation5] sm:$0xf] %vm963_vm4, %v1045_v60 }
 0x8ba   : > { %v1623_v62 = vsel %vm1095_vm3, %v3206_v61, 0.0 }
 0x8bb   : > { %v3214_v12 = vpop.eup %2483 }
 0x8bc   : > { %v1702_v14 = vsel %vm1095_vm3, %v3214_v12, 0.0 }
 0x8bd   : > { %1624 = vadd.xlane.f32.xlu2 %v1623_v62 }
 0x8c0   : > { %v1570_v63 = vld [vmem:[#allocation5] sm:$0xf] }
 0x8c1   : > { %v1722_v0 = vld [vmem:[#allocation5] sm:$0xf]  ;;  %v1575_v1 = vsel %vm1099_vm2, %v1570_v63, 0 }
 0x8c2   : > { %v1724_v2 = vunpack.c.l.b16 %v1722_v0  ;;  %1584 = vmatpush.bf16.msrb.mxu1 %v1575_v1  ;;  %v1643_v4 = vld [vmem:[#allocation5] sm:$0xf] }
 0x8c3   : > { %v1645_v6 = vunpack.c.l.b16 %v1643_v4 }
 0x8c4   : > { %v1725_v3 = vpack.c.b16 %v1724_v2, %v1724_v2 }
 0x8c5   : > { %v1646_v7 = vpack.c.b16 %v1645_v6, %v1645_v6 }
 0x8c6   : > { %1726 = vrot.lane.b32.xlu0 %v1725_v3, %s2785_s10 }
 0x8d5   : > { %1647 = vrot.lane.b32.xlu2 %v1646_v7, %s2787_s14  ;;  %s3409_s14 = sld [smem:[#allocation46_spill]] }
 0x8fe   : > { %1703 = vadd.xlane.f32.xlu2 %v1702_v14 }
 0x920   : > { %v1552_v15 = vpop.xlane.xlu2 %1551 }
 0x921   : > { %2485 = vrcp.f32 %v1552_v15  ;;  %v1564_v22 = vand.u32 2147483648, %v1552_v15  ;;  %v1562_v17 = vand.u32 2147483647, %v1552_v15  ;;  %vm1558_vm6 = vweird.f32 %v1552_v15 }
 0x923   : > { %v1565_v26 = vor.u32 1.1754944e-38, %v1564_v22  ;;  %vm1563_vm8 = vcmp.eq.f32.partialorder %v1562_v17, 8.507059e+37 }
 0x927   : > { %v2486_v16 = vpop.eup %2485 }
 0x928   : > { %v1554_v13 = vmul.f32 %v2486_v16, %v1552_v15  ;;  %v1777_v18 = vpop.xlane.xlu2 %1776  ;;  %vm1559_vm4 = vweird.f32 %v2486_v16 }
 0x929   : > { %v1778_v19 = vsub.f32 %v1771_v49, %v1777_v18  ;;  %vm1560_vm7 = vmor %vm1558_vm6, %vm1559_vm4  ;;  %v1801_v49 = vld [vmem:[#allocation5] sm:$0xf] }
 0x92a   : > { %v1555_v20 = vsub.f32 1.0, %v1554_v13  ;;  %v1803_v51 = vunpack.c.l.b16 %v1801_v49 }
 0x92b   : > { %v1779_v23 = vmul.f32 1.442695, %v1778_v19 }
 0x92c   : > { %v1556_v24 = vmul.f32 %v2486_v16, %v1555_v20  ;;  %v1804_v5 = vpack.c.b16 %v1803_v51, %v1803_v51 }
 0x92d   : > { %2487 = vpow2.f32 %v1779_v23 }
 0x92e   : > { %v1557_v25 = vadd.f32 %v2486_v16, %v1556_v24 }
 0x930   : > { %v1561_v27 = vsel %vm1560_vm7, %v2486_v16, %v1557_v25  ;;  %v1625_v28 = vpop.xlane.xlu2 %1624 }
 0x931   : > { %v1566_v29 = vsel %vm1563_vm8, %v1565_v26, %v1561_v27  ;;  %2489 = vrcp.f32 %v1625_v28  ;;  %v1637_v40 = vand.u32 2147483648, %v1625_v28  ;;  %v1635_v42 = vand.u32 2147483647, %v1625_v28 }
 0x932   : > { %v1568_v30 = vmul.f32 %v2480_v54, %v1566_v29  ;;  %vm1631_vm13 = vweird.f32 %v1625_v28 }
 0x933   : > { %v3218_v21 = vpop.eup %2487  ;;  %v1638_v44 = vor.u32 1.1754944e-38, %v1637_v40  ;;  %vm1636_vm15 = vcmp.eq.f32.partialorder %v1635_v42, 8.507059e+37 }
 0x934   : > { %v1781_v31 = vsel %vm1095_vm3, %v3218_v21, 0.0  ;;  %v1569_v32 = vpack.c.bf16 %v1568_v30, %v1568_v30 }
 0x935   : > { %1782 = vadd.xlane.f32.xlu1 %v1781_v31 }
 0x936   : > { %2262 = vmatmul.msk.bf16.vlgmr.msrb.gmra.mxu1 %vm1095_vm3, %v1569_v32  ;;  %v2319_v32 = vld [vmem:[#allocation15 + $0x8] sm:$0xff] }
 0x937   : > { %v2490_v33 = vpop.eup %2489  ;;  %1862 = vmatpush.bf16.msrb.mxu0 %v2319_v32 }
 0x938   : > { %v1727_v34 = vpop.permute.xlu0 %1726  ;;  %v1627_v35 = vmul.f32 %v2490_v33, %v1625_v28  ;;  %v1648_v37 = vpop.permute.xlu2 %1647  ;;  %vm1632_vm9 = vweird.f32 %v2490_v33 }
 0x939   : > { %v1732_v36 = vsel %vm1099_vm2, %v1727_v34, 0  ;;  %v1653_v38 = vsel %vm1099_vm2, %v1648_v37, 0  ;;  %vm1633_vm14 = vmor %vm1631_vm13, %vm1632_vm9 }
 0x93a   : > { %1741 = vmatpush.bf16.msra.mxu1 %v1732_v36  ;;  %v1628_v39 = vsub.f32 1.0, %v1627_v35  ;;  %1662 = vmatpush.bf16.msra.mxu3 %v1653_v38  ;;  %v2452_v36 = vld [vmem:[%s3337_s13] ss:$0 sm:$0xff] }
 0x93c   : > { %v1629_v41 = vmul.f32 %v2490_v33, %v1628_v39 }
 0x93e   : > { %v1630_v43 = vadd.f32 %v2490_v33, %v1629_v41 }
 0x940   : > { %v1634_v45 = vsel %vm1633_vm14, %v2490_v33, %v1630_v43  ;;  %v2318_v33 = vld [vmem:[#allocation15] sm:$0xff] }
 0x941   : > { %v1639_v46 = vsel %vm1636_vm15, %v1638_v44, %v1634_v45  ;;  %1863 = vmatpush.bf16.msrb.mxu0 %v2318_v33 }
 0x942   : > { %v1641_v47 = vmul.f32 %v3206_v61, %v1639_v46 }
 0x944   : > { %v1642_v48 = vpack.c.bf16 %v1641_v47, %v1641_v47  ;;  %v2321_v47 = vld [vmem:[#allocation16 + $0x8] sm:$0xff] }
 0x945   : > { %1932 = vmatpush.bf16.msrb.mxu1 %v2321_v47 }
 0x946   : > { %2264 = vmatmul.msk.bf16.vlgmr.msra.gmra.mxu3 %vm1095_vm3, %v1642_v48  ;;  %v2320_v48 = vld [vmem:[#allocation16] sm:$0xff] }
 0x949   : > { %1933 = vmatpush.bf16.msrb.mxu1 %v2320_v48 }
 0x94e   : > { %1805 = vrot.lane.b32.xlu1 %v1804_v5, %s2786_s1  ;;  %v2324_v5 = vld [vmem:[%s3340_s16 + $0x10] sm:$0xff]  ;;  %s2030_s1 = scalar_lea.sflag [#allocation9], %s3036_s12 }
 0x971   : > { %v1704_v52 = vpop.xlane.xlu2 %1703 }
 0x972   : > { %2491 = vrcp.f32 %v1704_v52  ;;  %v1716_v56 = vand.u32 2147483648, %v1704_v52  ;;  %v1714_v58 = vand.u32 2147483647, %v1704_v52  ;;  %vm1710_vm4 = vweird.f32 %v1704_v52 }
 0x974   : > { %v1717_v60 = vor.u32 1.1754944e-38, %v1716_v56  ;;  %vm1715_vm7 = vcmp.eq.f32.partialorder %v1714_v58, 8.507059e+37 }
 0x978   : > { %v2492_v53 = vpop.eup %2491 }
 0x979   : > { %v1706_v54 = vmul.f32 %v2492_v53, %v1704_v52  ;;  %vm1711_vm5 = vweird.f32 %v2492_v53 }
 0x97a   : > { %vm1712_vm6 = vmor %vm1710_vm4, %vm1711_vm5 }
 0x97b   : > { %v1707_v55 = vsub.f32 1.0, %v1706_v54 }
 0x97d   : > { %v1708_v57 = vmul.f32 %v2492_v53, %v1707_v55 }
 0x97f   : > { %v1709_v59 = vadd.f32 %v2492_v53, %v1708_v57 }
 0x981   : > { %v1713_v61 = vsel %vm1712_vm6, %v2492_v53, %v1709_v59  ;;  %v2453_v59 = vld [vmem:[%s3406_s4] ss:$0 sm:$0xff]  ;;  %s3411_s4 = sld [smem:[#allocation49_spill]] }
 0x982   : > { %v1718_v62 = vsel %vm1715_vm7, %v1717_v60, %v1713_v61  ;;  %v2454_v61 = vld [vmem:[%s3407_s15] ss:$0 sm:$0xff]  ;;  %s3412_s15 = sld [smem:[#allocation51_spill]] }
 0x983   : > { %v1720_v63 = vmul.f32 %v3214_v12, %v1718_v62 }
 0x985   : > { %v1721_v0 = vpack.c.bf16 %v1720_v63, %v1720_v63 }
 0x987   : > { %2266 = vmatmul.msk.bf16.vlgmr.msra.gmra.mxu1 %vm1095_vm3, %v1721_v0  ;;  %v2457_v32 = vld [vmem:[%s3411_s4] ss:$0 sm:$0xff] }
 0x9a8   : > { %v1783_v1 = vpop.xlane.xlu1 %1782 }
 0x9a9   : > { %2493 = vrcp.f32 %v1783_v1  ;;  %v1795_v11 = vand.u32 2147483648, %v1783_v1  ;;  %vm1789_vm9 = vweird.f32 %v1783_v1  ;;  %v1793_v14 = vand.u32 2147483647, %v1783_v1 }
 0x9ab   : > { %v1796_v15 = vor.u32 1.1754944e-38, %v1795_v11  ;;  %vm1794_vm14 = vcmp.eq.f32.partialorder %v1793_v14, 8.507059e+37  ;;  %v2456_v14 = vld [vmem:[%s3409_s14] ss:$0 sm:$0xff] }
 0x9af   : > { %v2494_v2 = vpop.eup %2493 }
 0x9b0   : > { %v1785_v3 = vmul.f32 %v2494_v2, %v1783_v1  ;;  %vm1790_vm8 = vweird.f32 %v2494_v2 }
 0x9b1   : > { %vm1791_vm13 = vmor %vm1789_vm9, %vm1790_vm8 }
 0x9b2   : > { %v1786_v4 = vsub.f32 1.0, %v1785_v3  ;;  %v2322_v3 = vld [vmem:[%s3340_s16] sm:$0xff] }
 0x9b3   : > { %v1586_v6 = vpop.f32.mrf.mxu1 }
 0x9b4   : > { %v1787_v7 = vmul.f32 %v2494_v2, %v1786_v4  ;;  %v1590_v9 = vpack.c.bf16 %v1586_v6, %v1586_v6  ;;  %v2455_v4 = vld [vmem:[%s3408_s0] ss:$0 sm:$0xff] }
 0x9b6   : > { %v1788_v10 = vadd.f32 %v2494_v2, %v1787_v7  ;;  %1591 = vst.msk [vmem:[#allocation6] sm:$0xf] %vm953_vm1, %v1590_v9 }
 0x9b8   : > { %v1792_v12 = vsel %vm1791_vm13, %v2494_v2, %v1788_v10  ;;  %v2323_v2 = vld [vmem:[%s3340_s16 + $0x8] sm:$0xff] }
 0x9b9   : > { %v1797_v13 = vsel %vm1794_vm14, %v1796_v15, %v1792_v12 }
 0x9ba   : > { %v1799_v18 = vmul.f32 %v3218_v21, %v1797_v13 }
 0x9bb   : > { %v1588_v16 = vpop.f32.mrf.mxu1 }
 0x9bc   : > { %v1800_v22 = vpack.c.bf16 %v1799_v18, %v1799_v18 }
 0x9c0   : > { %v1806_v19 = vpop.permute.xlu1 %1805 }
 0x9c1   : > { %v1811_v20 = vsel %vm1099_vm2, %v1806_v19, 0 }
 0x9c2   : > { %1820 = vmatpush.bf16.msrb.mxu3 %v1811_v20 }
 0x9c5   : > { %2268 = vmatmul.msk.bf16.vlgmr.msrb.gmra.mxu3 %vm1095_vm3, %v1800_v22 }
 0x9c9   : > { %v1664_v23 = vpop.f32.mrf.mxu3 }
 0x9ca   : > { %v1668_v24 = vpack.c.bf16 %v1664_v23, %v1664_v23 }
 0x9cc   : > { %1670 = vrot.lane.b32.xlu1 %v1668_v24, %s2789_s21  ;;  %s2207_s21 = sshll.u32 %s3036_s12, 3 }
 0x9cd   : > { %s873_s23 = scalar_lea.vmem [#allocation18], %s2207_s21  ;;  %s2699_s21 = scalar_lea.hbm %s3412_s15, 16 }
 0x9ce   : > { %s2043_s0 = sshll.u32 %s873_s23, 4  ;;  %s2044_s0 = int_to_ptr.vmem [resolvable:$true] %s2043_s0 }
 0x9d1   : > { %v1666_v17 = vpop.f32.mrf.mxu3 }
 0xa04   : > { %v1743_v25 = vpop.f32.mrf.mxu1 }
 0xa05   : > { %v1747_v26 = vpack.c.bf16 %v1743_v25, %v1743_v25 }
 0xa07   : > { %1749 = vrot.lane.b32.xlu2 %v1747_v26, %s2790_s5  ;;  %s2305_s5 = sshll.u32 %s3410_s20, 3 }
 0xa08   : > { %s2041_s22 = scalar_lea.hbm %s3412_s15, %s2305_s5 }
 0xa09   : > { %s2045_s10 = sshll.u32 %s2041_s22, 4  ;;  %s2046_s10 = int_to_ptr.hbm [resolvable:$true] %s2045_s10 }
 0xa0a   : > { %s2693_s14 = sshra.s32 %s2046_s10, 4  ;;  %s2694_s14 = int_to_ptr.hbm [resolvable:$true] %s2693_s14 }
 0xa0b   : > { %s2695_s20 = scalar_lea.hbm %s2694_s14, 8  ;;  %p2700_p10 = scmp.lt.s32.totalorder %s2694_s14, %s3412_s15 }
 0xa0c   : > { %v1745_v27 = vpop.f32.mrf.mxu1  ;;  %p2696_p1 = scmp.ne.s32.totalorder %s2694_s14, %s2695_s20  ;;  %p2701_p11 = scmp.lt.s32.totalorder %s2699_s21, %s2695_s20 }
 0xa0e   : > { %p2697_p3 = pnand %p2696_p1, %p3010_p2  ;;  %p2702_p12 = por %p2701_p11, %p2700_p10 }
 0xa10   : > { %p2698_p9 = pneg %p2697_p3 }
 0xa12   : > { %p2703_p13 = pnand %p2702_p12, %p2698_p9 }
 0xa3e   : > { %v1671_v28 = vpop.permute.xlu1 %1670 }
 0xa3f   : > { %1673 = vst.msk [vmem:[#allocation6] sm:$0xf] %vm1246_vm10, %v1671_v28  ;;  %vm1973_vm10 = vcmask 523264  }
 0xa48   : > { %v1822_v29 = vpop.f32.mrf.mxu3 }
 0xa49   : > { %v1826_v30 = vpack.c.bf16 %v1822_v29, %v1822_v29 }
 0xa4b   : > { %1828 = vrot.lane.b32.xlu1 %v1826_v30, %s2791_s27 }
 0xa50   : > { %v1824_v21 = vpop.f32.mrf.mxu3 }
 0xa61   : > { %v1750_v31 = vpop.permute.xlu2 %1749 }
 0xa62   : > { %1752 = vst.msk [vmem:[#allocation6] sm:$0xf] %vm1326_vm11, %v1750_v31 }
 0xabd   : > { %v1829_v34 = vpop.permute.xlu1 %1828 }
 0xabe   : > { %1831 = vst.msk [vmem:[#allocation6] sm:$0xf] %vm1406_vm12, %v1829_v34  ;;  %v2458_v34 = vld [vmem:[%s3414_s6] ss:$0 sm:$0xff] }
 0xac5   : > { %v1832_v35 = vld [vmem:[#allocation6] sm:$0xf] }
 0xac6   : > { %2277 = vmatmul.msk.bf16.vlgmr.msrb.gmra.mxu0 %vm900_vm0, %v1832_v35 }
 0xb43   : > { %v1865_v37 = vpop.f32.mrf.mxu0 }
 0xb44   : > { %v1866_v38 = vadd.f32 %v2452_v36, %v1865_v37 }
 0xb46   : > { %v1869_v39 = vadd.f32 %v1866_v38, %v3173_v8  ;;  %v2325_v8 = vld [vmem:[%s3340_s16 + $0x18] sm:$0xff] }
 0xb47   : > { %1981 = vmatpush.bf16.msrb.mxu2 %v2325_v8 }
 0xb48   : > { %v1870_v40 = vsel %vm900_vm0, %v1869_v39, 0.0 }
 0xb49   : > { %1871 = vadd.xlane.f32.xlu1 %v1870_v40 }
 0xb4b   : > { %v1867_v41 = vpop.f32.mrf.mxu0  ;;  %1982 = vmatpush.bf16.msrb.mxu2 %v2324_v5 }
 0xb4f   : > { %1983 = vmatpush.bf16.msrb.mxu2 %v2323_v2 }
 0xb53   : > { %1984 = vmatpush.bf16.msrb.mxu2 %v2322_v3 }
 0xbbc   : > { %v1872_v42 = vpop.xlane.xlu1 %1871 }
 0xbbd   : > { %v1873_v43 = vmul.f32 %v1872_v42, %v3162_v50 }
 0xbbf   : > { %v1874_v44 = vsub.f32 %v1869_v39, %v1873_v43 }
 0xbc1   : > { %v1875_v45 = vmul.f32 %v1874_v44, %v1874_v44 }
 0xbc3   : > { %v1876_v46 = vsel %vm900_vm0, %v1875_v45, 0.0 }
 0xbc4   : > { %1877 = vadd.xlane.f32.xlu0 %v1876_v46 }
 0xc37   : > { %v1878_v49 = vpop.xlane.xlu0 %1877 }
 0xc38   : > { %v1879_v51 = vmul.f32 %v1878_v49, %v3162_v50 }
 0xc3a   : > { %v1880_v52 = vadd.f32 1e-05, %v1879_v51 }
 0xc3c   : > { %2495 = vrsqrt.f32 %v1880_v52  ;;  %vm1887_vm2 = vweird.f32 %v1880_v52 }
 0xc42   : > { %v2496_v53 = vpop.eup %2495 }
 0xc43   : > { %v1882_v54 = vmul.f32 %v2496_v53, %v1880_v52  ;;  %vm1888_vm1 = vweird.f32 %v2496_v53 }
 0xc44   : > { %vm1889_vm3 = vmor %vm1887_vm2, %vm1888_vm1 }
 0xc45   : > { %v1883_v55 = vmul.f32 %v2496_v53, %v1882_v54 }
 0xc47   : > { %v1884_v56 = vmul.f32 0.5, %v1883_v55 }
 0xc49   : > { %v1885_v57 = vsub.f32 1.5, %v1884_v56 }
 0xc4b   : > { %v1886_v58 = vmul.f32 %v2496_v53, %v1885_v57 }
 0xc4d   : > { %v1890_v60 = vsel %vm1889_vm3, %v2496_v53, %v1886_v58 }
 0xc4e   : > { %v1891_v62 = vmul.f32 %v1890_v60, %v1874_v44 }
 0xc50   : > { %v1896_v63 = vmul.f32 %v2453_v59, %v1891_v62 }
 0xc52   : > { %v1901_v0 = vadd.f32 %v2454_v61, %v1896_v63 }
 0xc54   : > { %v1902_v1 = vpack.c.bf16 %v1901_v0, %v1901_v0 }
 0xc56   : > { %2286 = vmatmul.msk.bf16.vlgmr.msrb.gmra.mxu1 %vm900_vm0, %v1902_v1 }
 0xcd3   : > { %v1935_v6 = vpop.f32.mrf.mxu1 }
 0xcd4   : > { %v1936_v7 = vadd.f32 %v2455_v4, %v1935_v6 }
 0xcd6   : > { %v1939_v9 = vmax.f32 %v1936_v7, 0.0 }
 0xcd8   : > { %v1940_v10 = vpack.c.bf16 %v1939_v9, %v1939_v9 }
 0xcda   : > { %2303 = vmatmul.msk.bf16.vlgmr.msrb.gmra.mxu2 %vm1973_vm10, %v1940_v10 }
 0xcdb   : > { %v1937_v11 = vpop.f32.mrf.mxu1 }
 0xd5d   : > { %v1986_v12 = vpop.f32.mrf.mxu2 }
 0xd5e   : > { %v1990_v15 = vadd.f32 %v1986_v12, %v1901_v0 }
 0xd60   : > { %v1995_v16 = vadd.f32 %v2456_v14, %v1990_v15 }
 0xd62   : > { %v1996_v13 = vsel %vm900_vm0, %v1995_v16, 0.0 }
 0xd63   : > { %1997 = vadd.xlane.f32.xlu2 %v1996_v13 }
 0xd65   : > { %v1988_v18 = vpop.f32.mrf.mxu2 }
 0xdd6   : > { %v1998_v19 = vpop.xlane.xlu2 %1997 }
 0xdd7   : > { %v1999_v20 = vmul.f32 %v1998_v19, %v3162_v50 }
 0xdd9   : > { %v2000_v22 = vsub.f32 %v1995_v16, %v1999_v20 }
 0xddb   : > { %v2001_v23 = vmul.f32 %v2000_v22, %v2000_v22 }
 0xddd   : > { %v2002_v24 = vsel %vm900_vm0, %v2001_v23, 0.0 }
 0xdde   : > { %2003 = vadd.xlane.f32.xlu1 %v2002_v24 }
 0xe51   : > { %v2004_v17 = vpop.xlane.xlu1 %2003 }
 0xe52   : > { %v2005_v25 = vmul.f32 %v2004_v17, %v3162_v50 }
 0xe54   : > { %v2006_v26 = vadd.f32 1e-05, %v2005_v25 }
 0xe56   : > { %2497 = vrsqrt.f32 %v2006_v26  ;;  %vm2013_vm12 = vweird.f32 %v2006_v26 }
 0xe5c   : > { %v2498_v27 = vpop.eup %2497 }
 0xe5d   : > { %v2008_v28 = vmul.f32 %v2498_v27, %v2006_v26  ;;  %vm2014_vm11 = vweird.f32 %v2498_v27 }
 0xe5e   : > { %vm2015_vm15 = vmor %vm2013_vm12, %vm2014_vm11 }
 0xe5f   : > { %v2009_v29 = vmul.f32 %v2498_v27, %v2008_v28 }
 0xe61   : > { %v2010_v30 = vmul.f32 0.5, %v2009_v29 }
 0xe63   : > { %v2011_v21 = vsub.f32 1.5, %v2010_v30 }
 0xe65   : > { %v2012_v31 = vmul.f32 %v2498_v27, %v2011_v21 }
 0xe67   : > { %v2016_v50 = vsel %vm2015_vm15, %v2498_v27, %v2012_v31 }
 0xe68   : > { %v2017_v33 = vmul.f32 %v2016_v50, %v2000_v22 }
 0xe6a   : > { %v2022_v35 = vmul.f32 %v2457_v32, %v2017_v33 }
 0xe6c   : > { %v2027_v36 = vadd.f32 %v2458_v34, %v2022_v35 }
 0xe6e   : > { %2028 = vst.msk [vmem:[%s873_s23] sm:$0xff] %vm900_vm0, %v2027_v36 }
 0xe6f   : > { %2706 = shalt.err (!%p2703_p13)
}
 0xe70   : > { %2346 = dma.vmem_to_hbm [thread:$0]  (%p3010_p2), %s2044_s0, 128, %s2046_s10, %s2030_s1  }
 0xe71 PF: > { %s3415_s12 = sld [smem:[#allocation25_spill]]  ;;  %p2369_p0 = pnand %p2195_p6, %p3017_p5 }
 0xe73   : > { %p2370_p4 = pneg %p2369_p0 }
 0xe77   : > { %s2057_s29 = sand.u32 1, %s3415_s12  }
 0xe78   : > { %s2058_s22 = scalar_lea.sflag [#allocation9], %s2057_s29 }
 0xe79   : > { %2752 = dma.done.wait (%p2370_p4), %s2058_s22, 128  }
 0xe7a   : > { %2754 = vsyncadd (%p2370_p4), %s2058_s22, 4294967168  ;;  %s45_s2 = sadd.s32 1, %s2777_s2   ;;  %s3417_s17 = sld [smem:[#allocation26_spill]] }
 0xe7b   : > { %p42_p7 = scmp.ge.s32.totalorder %s45_s2, 4   ;;  %s3418_s27 = sld [smem:[#allocation31_spill]] }
 0xe7c   : > { %s3419_s28 = sld [smem:[#allocation28_spill]]  ;;  %s3421_s5 = smov %s2761_s26 }
 0xe7d   : > { %s3420_s6 = sld [smem:[#allocation29_spill]]  ;;  %44 = sbr.rel (!%p42_p7) target bundleno = 30 (0x1e), region = 195 }
 0xe80   : > { %s3422_s26 = smov %s3417_s17 }
 0xe82   :  { %2064 = vsyncpa [#allocation8], 1 }
 0xe83   :  { %2066 = vsyncpa [#allocation8 + $0x1], 1 }
 0xe84   :  { %2067 = vsyncpa [#allocation11], 1 }
 0xe85   :  { %2069 = vsyncpa [#allocation11 + $0x1], 1 }
 0xe86   :  { %2070 = vsyncpa [#allocation14], 1 }
 0xe87   :  { %2071 = vsyncpa [#allocation17], 1 }
 0xe88   :  { %2072 = vsyncpa [#allocation9], 1 }
 0xe89   :  { %2074 = vsyncpa [#allocation9 + $0x1], 1 }

</bundles_post_ra>
